<compile_context>
chip_gen: v6e
topology: v6e:2x2x1
jax: 0.10.0
libtpu: 0.0.40
codegen_flags: <defaults>
</compile_context>

<pallas_src>
import math
import numpy as np
import jax
import jax.numpy as jnp
from jax.experimental import pallas as pl
from jax.experimental.pallas import tpu as pltpu

# Small shapes consistent with the module
IN_DIM = 768          # nn.Linear(768, embed_dim)
EMBED_DIM = 32
NUM_HEADS = 4
HEAD_DIM = EMBED_DIM // NUM_HEADS
FF_DIM = 64
MAX_LEN = 128
NUM_CLASSES = 2
SEQ_LEN = 8
BATCH = 2
LN_EPS = 1e-5


def _layernorm(x, gamma, beta):
    mean = jnp.mean(x, axis=-1, keepdims=True)
    var = jnp.mean((x - mean) ** 2, axis=-1, keepdims=True)
    return (x - mean) * jax.lax.rsqrt(var + LN_EPS) * gamma + beta


def neurallog_kernel(
    x_ref,            # (R, IN_DIM)   R = BATCH*SEQ_LEN, batch-major flattened input
    win_ref,          # (IN_DIM, E)   input projection weight (pre-transposed)
    bin_ref,          # (1, E)
    pos_ref,          # (R, E)        positional encoding tiled over batch
    wqkv_ref,         # (E, 3E)       [Wq*scale | Wk | Wv]
    bqkv_ref,         # (1, 3E)
    hmask_ref,        # (H, E)        0/1 lane mask per head
    abias_ref,        # (R, R)        0 within a sequence, -1e9 across sequences
    wo_ref, bo_ref,   # (E, E), (1, E)
    g1_ref, be1_ref,  # (1, E), (1, E)
    w1_ref, b1_ref,   # (E, F), (1, F)
    w2_ref, b2_ref,   # (F, E), (1, E)
    g2_ref, be2_ref,  # (1, E), (1, E)
    pool_ref,         # (N, R)        mean-over-sequence pooling matrix
    wc_ref, bc_ref,   # (E, C), (1, C)
    o_ref,            # (N, C)
):
    # --- input projection + positional encoding (whole batch, one block) ---
    x = jnp.dot(x_ref[...], win_ref[...], preferred_element_type=jnp.float32) + bin_ref[...]
    x = x + pos_ref[...]                                                    # (R, E)

    # --- fused QKV projection (single MXU push; q already scaled by 1/sqrt(hd)) ---
    qkv = jnp.dot(x, wqkv_ref[...], preferred_element_type=jnp.float32) + bqkv_ref[...]
    q = qkv[:, :EMBED_DIM]
    k = qkv[:, EMBED_DIM:2 * EMBED_DIM]
    v = qkv[:, 2 * EMBED_DIM:]
    kt = k.T                                                                # hoisted: one transpose

    abias = abias_ref[...]
    ctx = jnp.zeros_like(x)
    for h in range(NUM_HEADS):                                              # static unroll (4)
        m = hmask_ref[h:h + 1, :]                                           # (1, E) head lane mask
        # (q ⊙ m) @ k.T restricts the contraction to head-h lanes == qh @ kh.T
        s = jnp.dot(q * m, kt, preferred_element_type=jnp.float32) + abias  # (R, R)
        s = s - jnp.max(s, axis=-1, keepdims=True)
        p = jnp.exp(s)
        p = p * pl.reciprocal(jnp.sum(p, axis=-1, keepdims=True), approx=True)
        # p @ (v ⊙ m) lands head-h context in its own lanes; accumulation replaces concat
        ctx = ctx + jnp.dot(p, v * m, preferred_element_type=jnp.float32)

    attn = jnp.dot(ctx, wo_ref[...], preferred_element_type=jnp.float32) + bo_ref[...]
    x1 = _layernorm(x + attn, g1_ref[...], be1_ref[...])                    # dropout == identity

    # --- FFN: Linear -> ReLU -> Linear ---
    h1 = jnp.dot(x1, w1_ref[...], preferred_element_type=jnp.float32) + b1_ref[...]
    h1 = jnp.maximum(h1, 0.0)
    ffn = jnp.dot(h1, w2_ref[...], preferred_element_type=jnp.float32) + b2_ref[...]
    x2 = _layernorm(x1 + ffn, g2_ref[...], be2_ref[...])

    # --- mean pooling over the sequence (as a matmul) + classifier ---
    pooled = jnp.dot(pool_ref[...], x2, preferred_element_type=jnp.float32)  # (N, E)
    o_ref[...] = jnp.dot(pooled, wc_ref[...], preferred_element_type=jnp.float32) + bc_ref[...]


def build_pos_encoding(position, d_model):
    """Same formula as PositionEmbedding._build_positional_encoding."""
    pos = np.arange(position)[:, np.newaxis]
    i = np.arange(d_model)[np.newaxis, :]
    angle_rads = pos / np.power(10000, 2 * (i // 2) / np.float32(d_model))
    angle_rads[:, 0::2] = np.sin(angle_rads[:, 0::2])
    angle_rads[:, 1::2] = np.cos(angle_rads[:, 1::2])
    return jnp.asarray(angle_rads, dtype=jnp.float32)                       # (max_len, d_model)


KERNEL_INPUT_ORDER = ("win", "bin", "pos", "wqkv", "bqkv", "hmask", "abias",
                      "wo", "bo", "g1", "be1", "w1", "b1", "w2", "b2",
                      "g2", "be2", "pool", "wc", "bc")


def prepare_kernel_inputs(params, batch, seq_len):
    """Wrapper-side layout work: all of it is free weight/constant preparation."""
    E, H, hd, F, C = EMBED_DIM, NUM_HEADS, HEAD_DIM, FF_DIM, NUM_CLASSES
    R = batch * seq_len
    scale = 1.0 / math.sqrt(hd)

    wq = params["in_proj_w"][:E]
    wk = params["in_proj_w"][E:2 * E]
    wv = params["in_proj_w"][2 * E:]
    bq = params["in_proj_b"][:E]
    bk = params["in_proj_b"][E:2 * E]
    bv = params["in_proj_b"][2 * E:]

    w_qkv = jnp.concatenate([wq.T * scale, wk.T, wv.T], axis=1)             # (E, 3E)
    b_qkv = jnp.concatenate([bq * scale, bk, bv]).reshape(1, 3 * E)

    head_masks = np.zeros((H, E), np.float32)
    for h in range(H):
        head_masks[h, h * hd:(h + 1) * hd] = 1.0

    attn_bias = np.full((R, R), -1e9, np.float32)                           # block-diag attention
    pool = np.zeros((batch, R), np.float32)
    for b in range(batch):
        attn_bias[b * seq_len:(b + 1) * seq_len, b * seq_len:(b + 1) * seq_len] = 0.0
        pool[b, b * seq_len:(b + 1) * seq_len] = 1.0 / seq_len

    pos = build_pos_encoding(MAX_LEN, E)[:seq_len]                          # (L, E)
    pos_tiled = jnp.tile(pos, (batch, 1))                                   # (R, E)

    return dict(
        win=params["w_in"].T, bin=params["b_in"].reshape(1, E),
        pos=pos_tiled,
        wqkv=w_qkv, bqkv=b_qkv,
        hmask=jnp.asarray(head_masks), abias=jnp.asarray(attn_bias),
        wo=params["out_w"].T, bo=params["out_b"].reshape(1, E),
        g1=params["g1"].reshape(1, E), be1=params["be1"].reshape(1, E),
        w1=params["w1"].T, b1=params["b1"].reshape(1, F),
        w2=params["w2"].T, b2=params["b2"].reshape(1, E),
        g2=params["g2"].reshape(1, E), be2=params["be2"].reshape(1, E),
        pool=jnp.asarray(pool),
        wc=params["w_c"].T, bc=params["b_c"].reshape(1, C),
    )


def neurallog_forward(x, params):
    """x: (batch, seq, IN_DIM) float32 -> logits (batch, NUM_CLASSES)."""
    N, L, D = x.shape
    prepped = prepare_kernel_inputs(params, N, L)
    x2d = x.reshape(N * L, D)                     # batch-major flatten; no transposes
    operands = [x2d] + [prepped[k] for k in KERNEL_INPUT_ORDER]
    vmem = pltpu.MemorySpace.VMEM
    return pl.pallas_call(
        neurallog_kernel,
        out_shape=jax.ShapeDtypeStruct((N, NUM_CLASSES), jnp.float32),
        in_specs=[pl.BlockSpec(memory_space=vmem) for _ in operands],
        out_specs=pl.BlockSpec(memory_space=vmem),
    )(*operands)


def make_params(key):
    """Raw parameters mirroring the PyTorch module's parameter shapes."""
    E, F, C, D = EMBED_DIM, FF_DIM, NUM_CLASSES, IN_DIM
    ks = jax.random.split(key, 16)

    def rnd(k, shape, s=0.1):
        return (s * jax.random.normal(k, shape)).astype(jnp.float32)

    return {
        "w_in": rnd(ks[0], (E, D)),            # input_projection.weight (E, 768)
        "b_in": rnd(ks[1], (E,), 0.05),
        "in_proj_w": rnd(ks[2], (3 * E, E)),   # MHA in_proj_weight
        "in_proj_b": rnd(ks[3], (3 * E,), 0.05),
        "out_w": rnd(ks[4], (E, E)),           # MHA out_proj.weight
        "out_b": rnd(ks[5], (E,), 0.05),
        "w1": rnd(ks[6], (F, E)),              # ffn[0].weight
        "b1": rnd(ks[7], (F,), 0.05),
        "w2": rnd(ks[8], (E, F)),              # ffn[2].weight
        "b2": rnd(ks[9], (E,), 0.05),
        "g1": 1.0 + rnd(ks[10], (E,)),
        "be1": rnd(ks[11], (E,), 0.05),
        "g2": 1.0 + rnd(ks[12], (E,)),
        "be2": rnd(ks[13], (E,), 0.05),
        "w_c": rnd(ks[14], (C, E)),            # classifier.weight
        "b_c": rnd(ks[15], (C,), 0.05),
    }


def ref_forward(x, p):
    """Pure-JAX mirror of the PyTorch NeuralLog forward (eval mode)."""
    E, H, hd = EMBED_DIM, NUM_HEADS, HEAD_DIM
    N, L, _ = x.shape
    h = x @ p["w_in"].T + p["b_in"]                                # (N, L, E)
    h = h + build_pos_encoding(MAX_LEN, E)[:L][None]

    def ln(y, g, b):
        m = jnp.mean(y, axis=-1, keepdims=True)
        v = jnp.mean((y - m) ** 2, axis=-1, keepdims=True)
        return (y - m) / jnp.sqrt(v + LN_EPS) * g + b

    def block(xb):                                                 # (L, E)
        q = xb @ p["in_proj_w"][:E].T + p["in_proj_b"][:E]
        k = xb @ p["in_proj_w"][E:2 * E].T + p["in_proj_b"][E:2 * E]
        v = xb @ p["in_proj_w"][2 * E:].T + p["in_proj_b"][2 * E:]
        qh = q.reshape(L, H, hd).transpose(1, 0, 2)
        kh = k.reshape(L, H, hd).transpose(1, 0, 2)
        vh = v.reshape(L, H, hd).transpose(1, 0, 2)
        s = jnp.einsum("hqd,hkd->hqk", qh, kh) / math.sqrt(hd)
        w = jax.nn.softmax(s, axis=-1)
        ctx = jnp.einsum("hqk,hkd->hqd", w, vh).transpose(1, 0, 2).reshape(L, E)
        attn = ctx @ p["out_w"].T + p["out_b"]
        x1 = ln(xb + attn, p["g1"], p["be1"])
        f = jax.nn.relu(x1 @ p["w1"].T + p["b1"]) @ p["w2"].T + p["b2"]
        return ln(x1 + f, p["g2"], p["be2"])

    y = jax.vmap(block)(h)                                         # (N, L, E)
    pooled = y.mean(axis=1)                                        # (N, E)
    return pooled @ p["w_c"].T + p["b_c"]                          # (N, C)


if __name__ == "__main__":
    key = jax.random.PRNGKey(0)
    kx, kp = jax.random.split(key)
    x = jax.random.normal(kx, (BATCH, SEQ_LEN, IN_DIM), jnp.float32)   # (batch, seq, 768)
    params = make_params(kp)

    out = jax.block_until_ready(neurallog_forward(x, params))
    ref = jax.block_until_ready(ref_forward(x, params))

    assert out.shape == (BATCH, NUM_CLASSES)
    # tolerance covers the EUP approximate-reciprocal softmax denominator
    np.testing.assert_allclose(np.asarray(out), np.asarray(ref), atol=1e-3, rtol=1e-3)
    print("KERNEL_OK")
</pallas_src>

<mosaic_0001>
module attributes {stable_mosaic.version = 11 : i64} {
  func.func @neurallog_kernel(%arg0: memref<16x768xf32, #tpu.memory_space<vmem>>, %arg1: memref<768x32xf32, #tpu.memory_space<vmem>>, %arg2: memref<1x32xf32, #tpu.memory_space<vmem>>, %arg3: memref<16x32xf32, #tpu.memory_space<vmem>>, %arg4: memref<32x96xf32, #tpu.memory_space<vmem>>, %arg5: memref<1x96xf32, #tpu.memory_space<vmem>>, %arg6: memref<4x32xf32, #tpu.memory_space<vmem>>, %arg7: memref<16x16xf32, #tpu.memory_space<vmem>>, %arg8: memref<32x32xf32, #tpu.memory_space<vmem>>, %arg9: memref<1x32xf32, #tpu.memory_space<vmem>>, %arg10: memref<1x32xf32, #tpu.memory_space<vmem>>, %arg11: memref<1x32xf32, #tpu.memory_space<vmem>>, %arg12: memref<32x64xf32, #tpu.memory_space<vmem>>, %arg13: memref<1x64xf32, #tpu.memory_space<vmem>>, %arg14: memref<64x32xf32, #tpu.memory_space<vmem>>, %arg15: memref<1x32xf32, #tpu.memory_space<vmem>>, %arg16: memref<1x32xf32, #tpu.memory_space<vmem>>, %arg17: memref<1x32xf32, #tpu.memory_space<vmem>>, %arg18: memref<2x16xf32, #tpu.memory_space<vmem>>, %arg19: memref<32x2xf32, #tpu.memory_space<vmem>>, %arg20: memref<1x2xf32, #tpu.memory_space<vmem>>, %arg21: memref<2x2xf32, #tpu.memory_space<vmem>>) attributes {dimension_semantics = [], scalar_prefetch = 0 : i64, scratch_operands = 0 : i64, tpu.core_type = #tpu.core_type<tc>} {
    %c0 = arith.constant 0 : index
    %c0_0 = arith.constant 0 : index
    %0 = vector.load %arg0[%c0, %c0_0] : memref<16x768xf32, #tpu.memory_space<vmem>>, vector<16x768xf32>
    %c0_1 = arith.constant 0 : index
    %c0_2 = arith.constant 0 : index
    %1 = vector.load %arg1[%c0_1, %c0_2] : memref<768x32xf32, #tpu.memory_space<vmem>>, vector<768x32xf32>
    %cst = arith.constant dense<0.000000e+00> : vector<16x32xf32>
    %2 = tpu.matmul %0, %1, %cst {dimension_numbers = #tpu.dot_dimension_numbers<[1], [0], [0], [1], [0, 0, 1, 1], [], []>} : vector<16x768xf32>, vector<768x32xf32>, vector<16x32xf32> -> vector<16x32xf32>
    %c0_3 = arith.constant 0 : index
    %c0_4 = arith.constant 0 : index
    %3 = vector.load %arg2[%c0_3, %c0_4] : memref<1x32xf32, #tpu.memory_space<vmem>>, vector<1x32xf32>
    %4 = vector.broadcast %3 : vector<1x32xf32> to vector<16x32xf32>
    %5 = arith.addf %2, %4 : vector<16x32xf32>
    %c0_5 = arith.constant 0 : index
    %c0_6 = arith.constant 0 : index
    %6 = vector.load %arg3[%c0_5, %c0_6] : memref<16x32xf32, #tpu.memory_space<vmem>>, vector<16x32xf32>
    %7 = arith.addf %5, %6 : vector<16x32xf32>
    %c0_7 = arith.constant 0 : index
    %c0_8 = arith.constant 0 : index
    %8 = vector.load %arg4[%c0_7, %c0_8] : memref<32x96xf32, #tpu.memory_space<vmem>>, vector<32x96xf32>
    %cst_9 = arith.constant dense<0.000000e+00> : vector<16x96xf32>
    %9 = tpu.matmul %7, %8, %cst_9 {dimension_numbers = #tpu.dot_dimension_numbers<[1], [0], [0], [1], [0, 0, 1, 1], [], []>} : vector<16x32xf32>, vector<32x96xf32>, vector<16x96xf32> -> vector<16x96xf32>
    %c0_10 = arith.constant 0 : index
    %c0_11 = arith.constant 0 : index
    %10 = vector.load %arg5[%c0_10, %c0_11] : memref<1x96xf32, #tpu.memory_space<vmem>>, vector<1x96xf32>
    %11 = vector.broadcast %10 : vector<1x96xf32> to vector<16x96xf32>
    %12 = arith.addf %9, %11 : vector<16x96xf32>
    %13 = vector.extract_strided_slice %12 {offsets = [0, 0], sizes = [16, 32], strides = [1, 1]} : vector<16x96xf32> to vector<16x32xf32>
    %14 = vector.extract_strided_slice %12 {offsets = [0, 32], sizes = [16, 32], strides = [1, 1]} : vector<16x96xf32> to vector<16x32xf32>
    %15 = vector.extract_strided_slice %12 {offsets = [0, 64], sizes = [16, 32], strides = [1, 1]} : vector<16x96xf32> to vector<16x32xf32>
    %16 = tpu.transpose %14, [1, 0] : vector<16x32xf32> -> vector<32x16xf32>
    %c0_12 = arith.constant 0 : index
    %c0_13 = arith.constant 0 : index
    %17 = vector.load %arg7[%c0_12, %c0_13] : memref<16x16xf32, #tpu.memory_space<vmem>>, vector<16x16xf32>
    %cst_14 = arith.constant 0.000000e+00 : f32
    %18 = vector.broadcast %cst_14 : f32 to vector<16x32xf32>
    %c0_15 = arith.constant 0 : index
    %c0_16 = arith.constant 0 : index
    %19 = vector.load %arg6[%c0_15, %c0_16] : memref<4x32xf32, #tpu.memory_space<vmem>>, vector<1x32xf32>
    %20 = vector.broadcast %19 : vector<1x32xf32> to vector<16x32xf32>
    %21 = arith.mulf %13, %20 : vector<16x32xf32>
    %cst_17 = arith.constant dense<0.000000e+00> : vector<16x16xf32>
    %22 = tpu.matmul %21, %16, %cst_17 {dimension_numbers = #tpu.dot_dimension_numbers<[1], [0], [0], [1], [0, 0, 1, 1], [], []>} : vector<16x32xf32>, vector<32x16xf32>, vector<16x16xf32> -> vector<16x16xf32>
    %23 = arith.addf %22, %17 : vector<16x16xf32>
    %cst_18 = arith.constant dense<0xFF800000> : vector<16xf32>
    %24 = vector.multi_reduction <maximumf>, %23, %cst_18 [1] : vector<16x16xf32> to vector<16xf32>
    %25 = vector.shape_cast %24 : vector<16xf32> to vector<16x1xf32>
    %26 = vector.broadcast %25 : vector<16x1xf32> to vector<16x16xf32>
    %27 = arith.subf %23, %26 : vector<16x16xf32>
    %28 = math.exp %27 : vector<16x16xf32>
    %cst_19 = arith.constant dense<0.000000e+00> : vector<16xf32>
    %29 = vector.multi_reduction <add>, %28, %cst_19 [1] : vector<16x16xf32> to vector<16xf32>
    %30 = vector.shape_cast %29 : vector<16xf32> to vector<16x1xf32>
    %31 = tpu.reciprocal %30 {approx = true} : vector<16x1xf32> -> vector<16x1xf32>
    %32 = vector.broadcast %31 : vector<16x1xf32> to vector<16x16xf32>
    %33 = arith.mulf %28, %32 : vector<16x16xf32>
    %34 = vector.broadcast %19 : vector<1x32xf32> to vector<16x32xf32>
    %35 = arith.mulf %15, %34 : vector<16x32xf32>
    %cst_20 = arith.constant dense<0.000000e+00> : vector<16x32xf32>
    %36 = tpu.matmul %33, %35, %cst_20 {dimension_numbers = #tpu.dot_dimension_numbers<[1], [0], [0], [1], [0, 0, 1, 1], [], []>} : vector<16x16xf32>, vector<16x32xf32>, vector<16x32xf32> -> vector<16x32xf32>
    %37 = arith.addf %18, %36 : vector<16x32xf32>
    %c1 = arith.constant 1 : index
    %c0_21 = arith.constant 0 : index
    %38 = vector.load %arg6[%c1, %c0_21] : memref<4x32xf32, #tpu.memory_space<vmem>>, vector<1x32xf32>
    %39 = vector.broadcast %38 : vector<1x32xf32> to vector<16x32xf32>
    %40 = arith.mulf %13, %39 : vector<16x32xf32>
    %cst_22 = arith.constant dense<0.000000e+00> : vector<16x16xf32>
    %41 = tpu.matmul %40, %16, %cst_22 {dimension_numbers = #tpu.dot_dimension_numbers<[1], [0], [0], [1], [0, 0, 1, 1], [], []>} : vector<16x32xf32>, vector<32x16xf32>, vector<16x16xf32> -> vector<16x16xf32>
    %42 = arith.addf %41, %17 : vector<16x16xf32>
    %cst_23 = arith.constant dense<0xFF800000> : vector<16xf32>
    %43 = vector.multi_reduction <maximumf>, %42, %cst_23 [1] : vector<16x16xf32> to vector<16xf32>
    %44 = vector.shape_cast %43 : vector<16xf32> to vector<16x1xf32>
    %45 = vector.broadcast %44 : vector<16x1xf32> to vector<16x16xf32>
    %46 = arith.subf %42, %45 : vector<16x16xf32>
    %47 = math.exp %46 : vector<16x16xf32>
    %cst_24 = arith.constant dense<0.000000e+00> : vector<16xf32>
    %48 = vector.multi_reduction <add>, %47, %cst_24 [1] : vector<16x16xf32> to vector<16xf32>
    %49 = vector.shape_cast %48 : vector<16xf32> to vector<16x1xf32>
    %50 = tpu.reciprocal %49 {approx = true} : vector<16x1xf32> -> vector<16x1xf32>
    %51 = vector.broadcast %50 : vector<16x1xf32> to vector<16x16xf32>
    %52 = arith.mulf %47, %51 : vector<16x16xf32>
    %53 = vector.broadcast %38 : vector<1x32xf32> to vector<16x32xf32>
    %54 = arith.mulf %15, %53 : vector<16x32xf32>
    %cst_25 = arith.constant dense<0.000000e+00> : vector<16x32xf32>
    %55 = tpu.matmul %52, %54, %cst_25 {dimension_numbers = #tpu.dot_dimension_numbers<[1], [0], [0], [1], [0, 0, 1, 1], [], []>} : vector<16x16xf32>, vector<16x32xf32>, vector<16x32xf32> -> vector<16x32xf32>
    %56 = arith.addf %37, %55 : vector<16x32xf32>
    %c2 = arith.constant 2 : index
    %c0_26 = arith.constant 0 : index
    %57 = vector.load %arg6[%c2, %c0_26] : memref<4x32xf32, #tpu.memory_space<vmem>>, vector<1x32xf32>
    %58 = vector.broadcast %57 : vector<1x32xf32> to vector<16x32xf32>
    %59 = arith.mulf %13, %58 : vector<16x32xf32>
    %cst_27 = arith.constant dense<0.000000e+00> : vector<16x16xf32>
    %60 = tpu.matmul %59, %16, %cst_27 {dimension_numbers = #tpu.dot_dimension_numbers<[1], [0], [0], [1], [0, 0, 1, 1], [], []>} : vector<16x32xf32>, vector<32x16xf32>, vector<16x16xf32> -> vector<16x16xf32>
    %61 = arith.addf %60, %17 : vector<16x16xf32>
    %cst_28 = arith.constant dense<0xFF800000> : vector<16xf32>
    %62 = vector.multi_reduction <maximumf>, %61, %cst_28 [1] : vector<16x16xf32> to vector<16xf32>
    %63 = vector.shape_cast %62 : vector<16xf32> to vector<16x1xf32>
    %64 = vector.broadcast %63 : vector<16x1xf32> to vector<16x16xf32>
    %65 = arith.subf %61, %64 : vector<16x16xf32>
    %66 = math.exp %65 : vector<16x16xf32>
    %cst_29 = arith.constant dense<0.000000e+00> : vector<16xf32>
    %67 = vector.multi_reduction <add>, %66, %cst_29 [1] : vector<16x16xf32> to vector<16xf32>
    %68 = vector.shape_cast %67 : vector<16xf32> to vector<16x1xf32>
    %69 = tpu.reciprocal %68 {approx = true} : vector<16x1xf32> -> vector<16x1xf32>
    %70 = vector.broadcast %69 : vector<16x1xf32> to vector<16x16xf32>
    %71 = arith.mulf %66, %70 : vector<16x16xf32>
    %72 = vector.broadcast %57 : vector<1x32xf32> to vector<16x32xf32>
    %73 = arith.mulf %15, %72 : vector<16x32xf32>
    %cst_30 = arith.constant dense<0.000000e+00> : vector<16x32xf32>
    %74 = tpu.matmul %71, %73, %cst_30 {dimension_numbers = #tpu.dot_dimension_numbers<[1], [0], [0], [1], [0, 0, 1, 1], [], []>} : vector<16x16xf32>, vector<16x32xf32>, vector<16x32xf32> -> vector<16x32xf32>
    %75 = arith.addf %56, %74 : vector<16x32xf32>
    %c3 = arith.constant 3 : index
    %c0_31 = arith.constant 0 : index
    %76 = vector.load %arg6[%c3, %c0_31] : memref<4x32xf32, #tpu.memory_space<vmem>>, vector<1x32xf32>
    %77 = vector.broadcast %76 : vector<1x32xf32> to vector<16x32xf32>
    %78 = arith.mulf %13, %77 : vector<16x32xf32>
    %cst_32 = arith.constant dense<0.000000e+00> : vector<16x16xf32>
    %79 = tpu.matmul %78, %16, %cst_32 {dimension_numbers = #tpu.dot_dimension_numbers<[1], [0], [0], [1], [0, 0, 1, 1], [], []>} : vector<16x32xf32>, vector<32x16xf32>, vector<16x16xf32> -> vector<16x16xf32>
    %80 = arith.addf %79, %17 : vector<16x16xf32>
    %cst_33 = arith.constant dense<0xFF800000> : vector<16xf32>
    %81 = vector.multi_reduction <maximumf>, %80, %cst_33 [1] : vector<16x16xf32> to vector<16xf32>
    %82 = vector.shape_cast %81 : vector<16xf32> to vector<16x1xf32>
    %83 = vector.broadcast %82 : vector<16x1xf32> to vector<16x16xf32>
    %84 = arith.subf %80, %83 : vector<16x16xf32>
    %85 = math.exp %84 : vector<16x16xf32>
    %cst_34 = arith.constant dense<0.000000e+00> : vector<16xf32>
    %86 = vector.multi_reduction <add>, %85, %cst_34 [1] : vector<16x16xf32> to vector<16xf32>
    %87 = vector.shape_cast %86 : vector<16xf32> to vector<16x1xf32>
    %88 = tpu.reciprocal %87 {approx = true} : vector<16x1xf32> -> vector<16x1xf32>
    %89 = vector.broadcast %88 : vector<16x1xf32> to vector<16x16xf32>
    %90 = arith.mulf %85, %89 : vector<16x16xf32>
    %91 = vector.broadcast %76 : vector<1x32xf32> to vector<16x32xf32>
    %92 = arith.mulf %15, %91 : vector<16x32xf32>
    %cst_35 = arith.constant dense<0.000000e+00> : vector<16x32xf32>
    %93 = tpu.matmul %90, %92, %cst_35 {dimension_numbers = #tpu.dot_dimension_numbers<[1], [0], [0], [1], [0, 0, 1, 1], [], []>} : vector<16x16xf32>, vector<16x32xf32>, vector<16x32xf32> -> vector<16x32xf32>
    %94 = arith.addf %75, %93 : vector<16x32xf32>
    %c0_36 = arith.constant 0 : index
    %c0_37 = arith.constant 0 : index
    %95 = vector.load %arg8[%c0_36, %c0_37] : memref<32x32xf32, #tpu.memory_space<vmem>>, vector<32x32xf32>
    %cst_38 = arith.constant dense<0.000000e+00> : vector<16x32xf32>
    %96 = tpu.matmul %94, %95, %cst_38 {dimension_numbers = #tpu.dot_dimension_numbers<[1], [0], [0], [1], [0, 0, 1, 1], [], []>} : vector<16x32xf32>, vector<32x32xf32>, vector<16x32xf32> -> vector<16x32xf32>
    %c0_39 = arith.constant 0 : index
    %c0_40 = arith.constant 0 : index
    %97 = vector.load %arg9[%c0_39, %c0_40] : memref<1x32xf32, #tpu.memory_space<vmem>>, vector<1x32xf32>
    %98 = vector.broadcast %97 : vector<1x32xf32> to vector<16x32xf32>
    %99 = arith.addf %96, %98 : vector<16x32xf32>
    %100 = arith.addf %7, %99 : vector<16x32xf32>
    %c0_41 = arith.constant 0 : index
    %c0_42 = arith.constant 0 : index
    %101 = vector.load %arg10[%c0_41, %c0_42] : memref<1x32xf32, #tpu.memory_space<vmem>>, vector<1x32xf32>
    %c0_43 = arith.constant 0 : index
    %c0_44 = arith.constant 0 : index
    %102 = vector.load %arg11[%c0_43, %c0_44] : memref<1x32xf32, #tpu.memory_space<vmem>>, vector<1x32xf32>
    %cst_45 = arith.constant dense<0.000000e+00> : vector<16xf32>
    %103 = vector.multi_reduction <add>, %100, %cst_45 [1] : vector<16x32xf32> to vector<16xf32>
    %104 = vector.shape_cast %103 : vector<16xf32> to vector<16x1xf32>
    %cst_46 = arith.constant 3.200000e+01 : f32
    %105 = vector.broadcast %cst_46 : f32 to vector<16x1xf32>
    %106 = arith.divf %104, %105 : vector<16x1xf32>
    %107 = vector.broadcast %106 : vector<16x1xf32> to vector<16x32xf32>
    %108 = arith.subf %100, %107 : vector<16x32xf32>
    %109 = arith.mulf %108, %108 : vector<16x32xf32>
    %cst_47 = arith.constant dense<0.000000e+00> : vector<16xf32>
    %110 = vector.multi_reduction <add>, %109, %cst_47 [1] : vector<16x32xf32> to vector<16xf32>
    %111 = vector.shape_cast %110 : vector<16xf32> to vector<16x1xf32>
    %cst_48 = arith.constant 3.200000e+01 : f32
    %112 = vector.broadcast %cst_48 : f32 to vector<16x1xf32>
    %113 = arith.divf %111, %112 : vector<16x1xf32>
    %114 = vector.broadcast %106 : vector<16x1xf32> to vector<16x32xf32>
    %115 = arith.subf %100, %114 : vector<16x32xf32>
    %cst_49 = arith.constant 9.99999974E-6 : f32
    %116 = vector.broadcast %cst_49 : f32 to vector<16x1xf32>
    %117 = arith.addf %113, %116 : vector<16x1xf32>
    %118 = math.rsqrt %117 : vector<16x1xf32>
    %119 = vector.broadcast %118 : vector<16x1xf32> to vector<16x32xf32>
    %120 = arith.mulf %115, %119 : vector<16x32xf32>
    %121 = vector.broadcast %101 : vector<1x32xf32> to vector<16x32xf32>
    %122 = arith.mulf %120, %121 : vector<16x32xf32>
    %123 = vector.broadcast %102 : vector<1x32xf32> to vector<16x32xf32>
    %124 = arith.addf %122, %123 : vector<16x32xf32>
    %c0_50 = arith.constant 0 : index
    %c0_51 = arith.constant 0 : index
    %125 = vector.load %arg12[%c0_50, %c0_51] : memref<32x64xf32, #tpu.memory_space<vmem>>, vector<32x64xf32>
    %cst_52 = arith.constant dense<0.000000e+00> : vector<16x64xf32>
    %126 = tpu.matmul %124, %125, %cst_52 {dimension_numbers = #tpu.dot_dimension_numbers<[1], [0], [0], [1], [0, 0, 1, 1], [], []>} : vector<16x32xf32>, vector<32x64xf32>, vector<16x64xf32> -> vector<16x64xf32>
    %c0_53 = arith.constant 0 : index
    %c0_54 = arith.constant 0 : index
    %127 = vector.load %arg13[%c0_53, %c0_54] : memref<1x64xf32, #tpu.memory_space<vmem>>, vector<1x64xf32>
    %128 = vector.broadcast %127 : vector<1x64xf32> to vector<16x64xf32>
    %129 = arith.addf %126, %128 : vector<16x64xf32>
    %cst_55 = arith.constant 0.000000e+00 : f32
    %130 = vector.broadcast %cst_55 : f32 to vector<16x64xf32>
    %131 = arith.maximumf %129, %130 : vector<16x64xf32>
    %c0_56 = arith.constant 0 : index
    %c0_57 = arith.constant 0 : index
    %132 = vector.load %arg14[%c0_56, %c0_57] : memref<64x32xf32, #tpu.memory_space<vmem>>, vector<64x32xf32>
    %cst_58 = arith.constant dense<0.000000e+00> : vector<16x32xf32>
    %133 = tpu.matmul %131, %132, %cst_58 {dimension_numbers = #tpu.dot_dimension_numbers<[1], [0], [0], [1], [0, 0, 1, 1], [], []>} : vector<16x64xf32>, vector<64x32xf32>, vector<16x32xf32> -> vector<16x32xf32>
    %c0_59 = arith.constant 0 : index
    %c0_60 = arith.constant 0 : index
    %134 = vector.load %arg15[%c0_59, %c0_60] : memref<1x32xf32, #tpu.memory_space<vmem>>, vector<1x32xf32>
    %135 = vector.broadcast %134 : vector<1x32xf32> to vector<16x32xf32>
    %136 = arith.addf %133, %135 : vector<16x32xf32>
    %137 = arith.addf %124, %136 : vector<16x32xf32>
    %c0_61 = arith.constant 0 : index
    %c0_62 = arith.constant 0 : index
    %138 = vector.load %arg16[%c0_61, %c0_62] : memref<1x32xf32, #tpu.memory_space<vmem>>, vector<1x32xf32>
    %c0_63 = arith.constant 0 : index
    %c0_64 = arith.constant 0 : index
    %139 = vector.load %arg17[%c0_63, %c0_64] : memref<1x32xf32, #tpu.memory_space<vmem>>, vector<1x32xf32>
    %cst_65 = arith.constant dense<0.000000e+00> : vector<16xf32>
    %140 = vector.multi_reduction <add>, %137, %cst_65 [1] : vector<16x32xf32> to vector<16xf32>
    %141 = vector.shape_cast %140 : vector<16xf32> to vector<16x1xf32>
    %cst_66 = arith.constant 3.200000e+01 : f32
    %142 = vector.broadcast %cst_66 : f32 to vector<16x1xf32>
    %143 = arith.divf %141, %142 : vector<16x1xf32>
    %144 = vector.broadcast %143 : vector<16x1xf32> to vector<16x32xf32>
    %145 = arith.subf %137, %144 : vector<16x32xf32>
    %146 = arith.mulf %145, %145 : vector<16x32xf32>
    %cst_67 = arith.constant dense<0.000000e+00> : vector<16xf32>
    %147 = vector.multi_reduction <add>, %146, %cst_67 [1] : vector<16x32xf32> to vector<16xf32>
    %148 = vector.shape_cast %147 : vector<16xf32> to vector<16x1xf32>
    %cst_68 = arith.constant 3.200000e+01 : f32
    %149 = vector.broadcast %cst_68 : f32 to vector<16x1xf32>
    %150 = arith.divf %148, %149 : vector<16x1xf32>
    %151 = vector.broadcast %143 : vector<16x1xf32> to vector<16x32xf32>
    %152 = arith.subf %137, %151 : vector<16x32xf32>
    %cst_69 = arith.constant 9.99999974E-6 : f32
    %153 = vector.broadcast %cst_69 : f32 to vector<16x1xf32>
    %154 = arith.addf %150, %153 : vector<16x1xf32>
    %155 = math.rsqrt %154 : vector<16x1xf32>
    %156 = vector.broadcast %155 : vector<16x1xf32> to vector<16x32xf32>
    %157 = arith.mulf %152, %156 : vector<16x32xf32>
    %158 = vector.broadcast %138 : vector<1x32xf32> to vector<16x32xf32>
    %159 = arith.mulf %157, %158 : vector<16x32xf32>
    %160 = vector.broadcast %139 : vector<1x32xf32> to vector<16x32xf32>
    %161 = arith.addf %159, %160 : vector<16x32xf32>
    %c0_70 = arith.constant 0 : index
    %c0_71 = arith.constant 0 : index
    %162 = vector.load %arg18[%c0_70, %c0_71] : memref<2x16xf32, #tpu.memory_space<vmem>>, vector<2x16xf32>
    %cst_72 = arith.constant dense<0.000000e+00> : vector<2x32xf32>
    %163 = tpu.matmul %162, %161, %cst_72 {dimension_numbers = #tpu.dot_dimension_numbers<[1], [0], [0], [1], [0, 0, 1, 1], [], []>} : vector<2x16xf32>, vector<16x32xf32>, vector<2x32xf32> -> vector<2x32xf32>
    %c0_73 = arith.constant 0 : index
    %c0_74 = arith.constant 0 : index
    %164 = vector.load %arg19[%c0_73, %c0_74] : memref<32x2xf32, #tpu.memory_space<vmem>>, vector<32x2xf32>
    %cst_75 = arith.constant dense<0.000000e+00> : vector<2x2xf32>
    %165 = tpu.matmul %163, %164, %cst_75 {dimension_numbers = #tpu.dot_dimension_numbers<[1], [0], [0], [1], [0, 0, 1, 1], [], []>} : vector<2x32xf32>, vector<32x2xf32>, vector<2x2xf32> -> vector<2x2xf32>
    %c0_76 = arith.constant 0 : index
    %c0_77 = arith.constant 0 : index
    %166 = vector.load %arg20[%c0_76, %c0_77] : memref<1x2xf32, #tpu.memory_space<vmem>>, vector<1x2xf32>
    %167 = vector.broadcast %166 : vector<1x2xf32> to vector<2x2xf32>
    %168 = arith.addf %165, %167 : vector<2x2xf32>
    %c0_78 = arith.constant 0 : index
    %c0_79 = arith.constant 0 : index
    %169 = vector.load %arg21[%c0_78, %c0_79] : memref<2x2xf32, #tpu.memory_space<vmem>>, vector<2x2xf32>
    tpu.vector_store %arg21[%c0_78, %c0_79], %168 {strides = array<i32>} : memref<2x2xf32, #tpu.memory_space<vmem>>, vector<2x2xf32>,
    return
  }
}

</mosaic_0001>

<bundles_post_ra>
// kernel: tpu_custom_call.1
= control target key start
LH: loop header
LB: loop body
LE: loop exit
PB: predicated region body
PF: predicated region fallthrough
CT: control target
= control target key end

     0   :  { %s3031_s0 = inlined_call_operand.vmem [shape: f32[16,768], index: 0, kind: input, shape index: {}]   ;;  %s3032_s1 = inlined_call_operand.vmem [shape: f32[768,32], index: 1, kind: input, shape index: {}]   ;;  %s3033_s2 = inlined_call_operand.vmem [shape: f32[1,32], index: 2, kind: input, shape index: {}]   ;;  %s3034_s3 = inlined_call_operand.vmem [shape: f32[16,32], index: 3, kind: input, shape index: {}]   ;;  %s3035_s4 = inlined_call_operand.vmem [shape: f32[32,96], index: 4, kind: input, shape index: {}]   ;;  %s3036_s5 = inlined_call_operand.vmem [shape: f32[1,96], index: 5, kind: input, shape index: {}]   ;;  %s3037_s6 = inlined_call_operand.vmem [shape: f32[4,32], index: 6, kind: input, shape index: {}]   ;;  %s3038_s7 = inlined_call_operand.vmem [shape: f32[16,16], index: 7, kind: input, shape index: {}]   ;;  %s3039_s8 = inlined_call_operand.vmem [shape: f32[32,32], index: 8, kind: input, shape index: {}]   ;;  %s3040_s9 = inlined_call_operand.vmem [shape: f32[1,32], index: 9, kind: input, shape index: {}]   ;;  %s3041_s10 = inlined_call_operand.vmem [shape: f32[1,32], index: 10, kind: input, shape index: {}]   ;;  %s3042_s11 = inlined_call_operand.vmem [shape: f32[1,32], index: 11, kind: input, shape index: {}]   ;;  %s3043_s12 = inlined_call_operand.vmem [shape: f32[32,64], index: 12, kind: input, shape index: {}]   ;;  %s3044_s13 = inlined_call_operand.vmem [shape: f32[1,64], index: 13, kind: input, shape index: {}]   ;;  %s3045_s14 = inlined_call_operand.vmem [shape: f32[64,32], index: 14, kind: input, shape index: {}]   ;;  %s3046_s15 = inlined_call_operand.vmem [shape: f32[1,32], index: 15, kind: input, shape index: {}]   ;;  %s3047_s16 = inlined_call_operand.vmem [shape: f32[1,32], index: 16, kind: input, shape index: {}]   ;;  %s3048_s17 = inlined_call_operand.vmem [shape: f32[1,32], index: 17, kind: input, shape index: {}]   ;;  %s3049_s18 = inlined_call_operand.vmem [shape: f32[2,16], index: 18, kind: input, shape index: {}]   ;;  %s3050_s19 = inlined_call_operand.vmem [shape: f32[32,2], index: 19, kind: input, shape index: {}]   ;;  %s3051_s20 = inlined_call_operand.vmem [shape: f32[1,2], index: 20, kind: input, shape index: {}]   ;;  %s3052_s21 = inlined_call_operand.hbm [shape: f32[2,2], index: 21, kind: output, shape index: {}]  }
   0x1   :  { %3057 = sst [smem:[#allocation5_spill]] %s3031_s0 }
   0x2   :  { %3058 = sst [smem:[#allocation6_spill]] %s3032_s1 }
   0x3   :  { %3059 = sst [smem:[#allocation7_spill]] %s3033_s2 }
   0x4   :  { %3060 = sst [smem:[#allocation8_spill]] %s3034_s3 }
   0x5   :  { %3061 = sst [smem:[#allocation9_spill]] %s3035_s4 }
   0x6   :  { %3062 = sst [smem:[#allocation10_spill]] %s3036_s5 }
   0x7   :  { %s3063_s26 = sld [smem:[#allocation6_spill]] }
   0x8   :  { %s3064_s22 = sld [smem:[#allocation5_spill]] }
   0xd   :  { %v112_v0 = vld [vmem:[%s3063_s26 + $0xf8] sm:$0xff]  ;;  %v111_v2 = vld [vmem:[%s3063_s26 + $0xf0] sm:$0xff]  ;;  %v110_v6 = vld [vmem:[%s3063_s26 + $0xe8] sm:$0xff] }
   0xe   :  { %v96_v1 = vld [vmem:[%s3063_s26 + $0x78] sm:$0xff]  ;;  %1941 = vmatprep.subr.mxu0 %v112_v0  ;;  %v95_v4 = vld [vmem:[%s3063_s26 + $0x70] sm:$0xff]  ;;  %v94_v8 = vld [vmem:[%s3063_s26 + $0x68] sm:$0xff] }
   0xf   :  { %v144_v3 = vld [vmem:[%s3063_s26 + $0x1f8] sm:$0xff]  ;;  %1942 = vmatpush3.msra.mxu0 %v96_v1  ;;  %v143_v7 = vld [vmem:[%s3063_s26 + $0x1f0] sm:$0xff]  ;;  %v142_v10 = vld [vmem:[%s3063_s26 + $0x1e8] sm:$0xff] }
  0x10   :  { %v128_v5 = vld [vmem:[%s3063_s26 + $0x178] sm:$0xff]  ;;  %1979 = vmatprep.subr.mxu1 %v144_v3  ;;  %1943 = vmatprep.subr.mxu0 %v111_v2  ;;  %v127_v9 = vld [vmem:[%s3063_s26 + $0x170] sm:$0xff]  ;;  %v109_v11 = vld [vmem:[%s3063_s26 + $0xe0] sm:$0xff] }
  0x11   :  { %1980 = vmatpush3.msra.mxu1 %v128_v5  ;;  %1944 = vmatpush3.msra.mxu0 %v95_v4  ;;  %v126_v12 = vld [vmem:[%s3063_s26 + $0x168] sm:$0xff]  ;;  %v93_v13 = vld [vmem:[%s3063_s26 + $0x60] sm:$0xff]  ;;  %v108_v15 = vld [vmem:[%s3063_s26 + $0xd8] sm:$0xff] }
  0x12   :  { %1981 = vmatprep.subr.mxu1 %v143_v7  ;;  %1945 = vmatprep.subr.mxu0 %v110_v6  ;;  %v141_v14 = vld [vmem:[%s3063_s26 + $0x1e0] sm:$0xff]  ;;  %v92_v17 = vld [vmem:[%s3063_s26 + $0x58] sm:$0xff]  ;;  %v107_v19 = vld [vmem:[%s3063_s26 + $0xd0] sm:$0xff] }
  0x13   :  { %1982 = vmatpush3.msra.mxu1 %v127_v9  ;;  %1946 = vmatpush3.msra.mxu0 %v94_v8  ;;  %v125_v16 = vld [vmem:[%s3063_s26 + $0x160] sm:$0xff]  ;;  %v140_v18 = vld [vmem:[%s3063_s26 + $0x1d8] sm:$0xff]  ;;  %v91_v21 = vld [vmem:[%s3063_s26 + $0x50] sm:$0xff] }
  0x14   :  { %1983 = vmatprep.subr.mxu1 %v142_v10  ;;  %1947 = vmatprep.subr.mxu0 %v109_v11  ;;  %v124_v20 = vld [vmem:[%s3063_s26 + $0x158] sm:$0xff]  ;;  %v139_v22 = vld [vmem:[%s3063_s26 + $0x1d0] sm:$0xff]  ;;  %v106_v23 = vld [vmem:[%s3063_s26 + $0xc8] sm:$0xff] }
  0x15   :  { %1984 = vmatpush3.msra.mxu1 %v126_v12  ;;  %1948 = vmatpush3.msra.mxu0 %v93_v13  ;;  %v123_v24 = vld [vmem:[%s3063_s26 + $0x150] sm:$0xff]  ;;  %v90_v25 = vld [vmem:[%s3063_s26 + $0x48] sm:$0xff]  ;;  %v105_v27 = vld [vmem:[%s3063_s26 + $0xc0] sm:$0xff] }
  0x16   :  { %1985 = vmatprep.subr.mxu1 %v141_v14  ;;  %1949 = vmatprep.subr.mxu0 %v108_v15  ;;  %v138_v26 = vld [vmem:[%s3063_s26 + $0x1c8] sm:$0xff]  ;;  %v89_v29 = vld [vmem:[%s3063_s26 + $0x40] sm:$0xff]  ;;  %v104_v31 = vld [vmem:[%s3063_s26 + $0xb8] sm:$0xff] }
  0x17   :  { %1986 = vmatpush3.msra.mxu1 %v125_v16  ;;  %1950 = vmatpush3.msra.mxu0 %v92_v17  ;;  %v122_v28 = vld [vmem:[%s3063_s26 + $0x148] sm:$0xff]  ;;  %v137_v30 = vld [vmem:[%s3063_s26 + $0x1c0] sm:$0xff]  ;;  %v88_v33 = vld [vmem:[%s3063_s26 + $0x38] sm:$0xff] }
  0x18   :  { %1987 = vmatprep.subr.mxu1 %v140_v18  ;;  %1951 = vmatprep.subr.mxu0 %v107_v19  ;;  %v121_v32 = vld [vmem:[%s3063_s26 + $0x140] sm:$0xff]  ;;  %v136_v34 = vld [vmem:[%s3063_s26 + $0x1b8] sm:$0xff]  ;;  %v103_v35 = vld [vmem:[%s3063_s26 + $0xb0] sm:$0xff] }
  0x19   :  { %1988 = vmatpush3.msra.mxu1 %v124_v20  ;;  %1952 = vmatpush3.msra.mxu0 %v91_v21  ;;  %v120_v36 = vld [vmem:[%s3063_s26 + $0x138] sm:$0xff]  ;;  %v87_v37 = vld [vmem:[%s3063_s26 + $0x30] sm:$0xff]  ;;  %v102_v39 = vld [vmem:[%s3063_s26 + $0xa8] sm:$0xff] }
  0x1a   :  { %1989 = vmatprep.subr.mxu1 %v139_v22  ;;  %1953 = vmatprep.subr.mxu0 %v106_v23  ;;  %v135_v38 = vld [vmem:[%s3063_s26 + $0x1b0] sm:$0xff]  ;;  %v86_v41 = vld [vmem:[%s3063_s26 + $0x28] sm:$0xff]  ;;  %v101_v43 = vld [vmem:[%s3063_s26 + $0xa0] sm:$0xff] }
  0x1b   :  { %1990 = vmatpush3.msra.mxu1 %v123_v24  ;;  %1954 = vmatpush3.msra.mxu0 %v90_v25  ;;  %v119_v40 = vld [vmem:[%s3063_s26 + $0x130] sm:$0xff]  ;;  %v134_v42 = vld [vmem:[%s3063_s26 + $0x1a8] sm:$0xff]  ;;  %v85_v45 = vld [vmem:[%s3063_s26 + $0x20] sm:$0xff] }
  0x1c   :  { %1991 = vmatprep.subr.mxu1 %v138_v26  ;;  %1955 = vmatprep.subr.mxu0 %v105_v27  ;;  %v118_v44 = vld [vmem:[%s3063_s26 + $0x128] sm:$0xff]  ;;  %v133_v46 = vld [vmem:[%s3063_s26 + $0x1a0] sm:$0xff]  ;;  %v100_v47 = vld [vmem:[%s3063_s26 + $0x98] sm:$0xff] }
  0x1d   :  { %1992 = vmatpush3.msra.mxu1 %v122_v28  ;;  %1956 = vmatpush3.msra.mxu0 %v89_v29  ;;  %v117_v48 = vld [vmem:[%s3063_s26 + $0x120] sm:$0xff]  ;;  %v84_v49 = vld [vmem:[%s3063_s26 + $0x18] sm:$0xff]  ;;  %v99_v51 = vld [vmem:[%s3063_s26 + $0x90] sm:$0xff] }
  0x1e   :  { %1993 = vmatprep.subr.mxu1 %v137_v30  ;;  %1957 = vmatprep.subr.mxu0 %v104_v31  ;;  %v132_v50 = vld [vmem:[%s3063_s26 + $0x198] sm:$0xff]  ;;  %v83_v53 = vld [vmem:[%s3063_s26 + $0x10] sm:$0xff]  ;;  %v98_v55 = vld [vmem:[%s3063_s26 + $0x88] sm:$0xff] }
  0x1f   :  { %1994 = vmatpush3.msra.mxu1 %v121_v32  ;;  %1958 = vmatpush3.msra.mxu0 %v88_v33  ;;  %v116_v52 = vld [vmem:[%s3063_s26 + $0x118] sm:$0xff]  ;;  %v131_v54 = vld [vmem:[%s3063_s26 + $0x190] sm:$0xff]  ;;  %v82_v57 = vld [vmem:[%s3063_s26 + $0x8] sm:$0xff] }
  0x20   :  { %1995 = vmatprep.subr.mxu1 %v136_v34  ;;  %1959 = vmatprep.subr.mxu0 %v103_v35  ;;  %v115_v56 = vld [vmem:[%s3063_s26 + $0x110] sm:$0xff]  ;;  %v130_v58 = vld [vmem:[%s3063_s26 + $0x188] sm:$0xff]  ;;  %v97_v59 = vld [vmem:[%s3063_s26 + $0x80] sm:$0xff] }
  0x21   :  { %1996 = vmatpush3.msra.mxu1 %v120_v36  ;;  %1960 = vmatpush3.msra.mxu0 %v87_v37  ;;  %v70_v60 = vld [vmem:[%s3064_s22 + $0x8] sm:$0xff]  ;;  %v81_v61 = vld [vmem:[%s3063_s26] sm:$0xff]  ;;  %v176_v1 = vld [vmem:[%s3063_s26 + $0x2f8] sm:$0xff] }
  0x22   :  { %1997 = vmatprep.subr.mxu1 %v135_v38  ;;  %1961 = vmatprep.subr.mxu0 %v102_v39  ;;  %v114_v62 = vld [vmem:[%s3063_s26 + $0x108] sm:$0xff]  ;;  %v69_v63 = vld [vmem:[%s3064_s22] sm:$0xff]  ;;  %v72_v3 = vld [vmem:[%s3064_s22 + $0x18] sm:$0xff] }
  0x23   :  { %1998 = vmatpush3.msra.mxu1 %v119_v40  ;;  %1962 = vmatpush3.msra.mxu0 %v86_v41  ;;  %v129_v0 = vld [vmem:[%s3063_s26 + $0x180] sm:$0xff]  ;;  %v160_v4 = vld [vmem:[%s3063_s26 + $0x278] sm:$0xff]  ;;  %v71_v5 = vld [vmem:[%s3064_s22 + $0x10] sm:$0xff] }
  0x24   :  { %1999 = vmatprep.subr.mxu1 %v134_v42  ;;  %1963 = vmatprep.subr.mxu0 %v101_v43  ;;  %v113_v2 = vld [vmem:[%s3063_s26 + $0x100] sm:$0xff]  ;;  %v175_v6 = vld [vmem:[%s3063_s26 + $0x2f0] sm:$0xff]  ;;  %v76_v8 = vld [vmem:[%s3064_s22 + $0x38] sm:$0xff] }
  0x25   :  { %2000 = vmatpush3.msra.mxu1 %v118_v44  ;;  %1964 = vmatpush3.msra.mxu0 %v85_v45  ;;  %v159_v7 = vld [vmem:[%s3063_s26 + $0x270] sm:$0xff]  ;;  %v174_v9 = vld [vmem:[%s3063_s26 + $0x2e8] sm:$0xff] }
  0x26   :  { %2001 = vmatprep.subr.mxu1 %v133_v46  ;;  %1965 = vmatprep.subr.mxu0 %v100_v47  ;;  %v75_v10 = vld [vmem:[%s3064_s22 + $0x30] sm:$0xff]  ;;  %v158_v11 = vld [vmem:[%s3063_s26 + $0x268] sm:$0xff] }
  0x27   :  { %2002 = vmatpush3.msra.mxu1 %v117_v48  ;;  %1966 = vmatpush3.msra.mxu0 %v84_v49  ;;  %v78_v12 = vld [vmem:[%s3064_s22 + $0x48] sm:$0xff] }
  0x28   :  { %2003 = vmatprep.subr.mxu1 %v132_v50  ;;  %1967 = vmatprep.subr.mxu0 %v99_v51 }
  0x29   :  { %2004 = vmatpush3.msra.mxu1 %v116_v52  ;;  %1968 = vmatpush3.msra.mxu0 %v83_v53 }
  0x2a   :  { %2005 = vmatprep.subr.mxu1 %v131_v54  ;;  %1969 = vmatprep.subr.mxu0 %v98_v55 }
  0x2b   :  { %2006 = vmatpush3.msra.mxu1 %v115_v56  ;;  %1970 = vmatpush3.msra.mxu0 %v82_v57 }
  0x2c   :  { %2007 = vmatprep.subr.mxu1 %v130_v58  ;;  %1971 = vmatprep.subr.mxu0 %v97_v59 }
  0x2d   :  { %248 = vmatprep.mubr.f32.mxu0 %v70_v60  ;;  %1972 = vmatpush3.msra.mxu0 %v81_v61 }
  0x2e   :  { %2008 = vmatpush3.msra.mxu1 %v114_v62  ;;  %249 = vmatmul.mubr.f32.vlgmr.msra.gmra.mxu0 %v69_v63 }
  0x2f   :  { %2009 = vmatprep.subr.mxu1 %v129_v0  ;;  %2017 = vmatprep.subr.mxu0 %v176_v1 }
  0x30   :  { %2010 = vmatpush3.msra.mxu1 %v113_v2  ;;  %323 = vmatprep.mubr.f32.mxu1 %v72_v3 }
  0x31   :  { %2018 = vmatpush3.msra.mxu0 %v160_v4  ;;  %324 = vmatmul.mubr.f32.vlgmr.msra.gmra.mxu1 %v71_v5 }
  0x32   :  { %2019 = vmatprep.subr.mxu0 %v175_v6 }
  0x33   :  { %26 = vsyncpa [#allocation3], 0  ;;  %2020 = vmatpush3.msra.mxu0 %v159_v7  ;;  %v173_v13 = vld [vmem:[%s3063_s26 + $0x2e0] sm:$0xff]  ;;  %253 = vmatprep.mubr.f32.mxu0 %v76_v8  ;;  %v74_v16 = vld [vmem:[%s3064_s22 + $0x28] sm:$0xff]  ;;  %s3065_s25 = sld [smem:[#allocation9_spill]]  ;;  %vm424_vm0 = vcmask 261120  }
  0x34   :  { %v77_v14 = vld [vmem:[%s3064_s22 + $0x40] sm:$0xff]  ;;  %2021 = vmatprep.subr.mxu0 %v174_v9  ;;  %254 = vmatmul.mubr.f32.gmra.mxu0 %v75_v10  ;;  %v172_v17 = vld [vmem:[%s3063_s26 + $0x2d8] sm:$0xff]  ;;  %v171_v19 = vld [vmem:[%s3063_s26 + $0x2d0] sm:$0xff]  ;;  %s3066_s5 = sld [smem:[#allocation7_spill]]  ;;  %s2316_s28 = smov 96   ;;  %vm606_vm1 = vcmask 130048  }
  0x35   :  { %v157_v15 = vld [vmem:[%s3063_s26 + $0x260] sm:$0xff]  ;;  %2022 = vmatpush3.msra.mxu0 %v158_v11  ;;  %328 = vmatprep.mubr.f32.mxu1 %v78_v12  ;;  %v156_v18 = vld [vmem:[%s3063_s26 + $0x258] sm:$0xff]  ;;  %v155_v20 = vld [vmem:[%s3063_s26 + $0x250] sm:$0xff]  ;;  %s3067_s24 = sld [smem:[#allocation8_spill]]  ;;  %vm1591_vm2 = vcmask 523264   ;;  %vm2319_vm3 = vmmov 0  }
  0x36   :  { %2023 = vmatprep.subr.mxu0 %v173_v13  ;;  %329 = vmatmul.mubr.f32.gmra.mxu1 %v77_v14  ;;  %v170_v21 = vld [vmem:[%s3063_s26 + $0x2c8] sm:$0xff]  ;;  %v169_v23 = vld [vmem:[%s3063_s26 + $0x2c0] sm:$0xff]  ;;  %v168_v25 = vld [vmem:[%s3063_s26 + $0x2b8] sm:$0xff]  ;;  %s3068_s3 = sld [smem:[#allocation10_spill]]  ;;  %vm1877_vm4 = vcmask 9216  }
  0x37   :  { %2024 = vmatpush3.msra.mxu0 %v157_v15  ;;  %398 = vmatprep.mubr.f32.mxu0 %v74_v16  ;;  %v154_v22 = vld [vmem:[%s3063_s26 + $0x248] sm:$0xff]  ;;  %v153_v24 = vld [vmem:[%s3063_s26 + $0x240] sm:$0xff]  ;;  %v152_v26 = vld [vmem:[%s3063_s26 + $0x238] sm:$0xff] }
  0x38   :  { %2025 = vmatprep.subr.mxu0 %v172_v17  ;;  %v167_v27 = vld [vmem:[%s3063_s26 + $0x2b0] sm:$0xff]  ;;  %v166_v29 = vld [vmem:[%s3063_s26 + $0x2a8] sm:$0xff]  ;;  %v165_v31 = vld [vmem:[%s3063_s26 + $0x2a0] sm:$0xff] }
  0x39   :  { %2026 = vmatpush3.msra.mxu0 %v156_v18  ;;  %v151_v28 = vld [vmem:[%s3063_s26 + $0x230] sm:$0xff]  ;;  %v150_v30 = vld [vmem:[%s3063_s26 + $0x228] sm:$0xff]  ;;  %v149_v32 = vld [vmem:[%s3063_s26 + $0x220] sm:$0xff] }
  0x3a   :  { %2027 = vmatprep.subr.mxu0 %v171_v19  ;;  %v164_v33 = vld [vmem:[%s3063_s26 + $0x298] sm:$0xff]  ;;  %v163_v35 = vld [vmem:[%s3063_s26 + $0x290] sm:$0xff]  ;;  %v162_v37 = vld [vmem:[%s3063_s26 + $0x288] sm:$0xff] }
  0x3b   :  { %2028 = vmatpush3.msra.mxu0 %v155_v20  ;;  %v148_v34 = vld [vmem:[%s3063_s26 + $0x218] sm:$0xff]  ;;  %v147_v36 = vld [vmem:[%s3063_s26 + $0x210] sm:$0xff]  ;;  %v146_v38 = vld [vmem:[%s3063_s26 + $0x208] sm:$0xff] }
  0x3c   :  { %2029 = vmatprep.subr.mxu0 %v170_v21  ;;  %v161_v39 = vld [vmem:[%s3063_s26 + $0x280] sm:$0xff]  ;;  %v80_v42 = vld [vmem:[%s3064_s22 + $0x58] sm:$0xff]  ;;  %v79_v43 = vld [vmem:[%s3064_s22 + $0x50] sm:$0xff] }
  0x3d   :  { %2030 = vmatpush3.msra.mxu0 %v154_v22  ;;  %v145_v40 = vld [vmem:[%s3063_s26 + $0x200] sm:$0xff]  ;;  %v416_v44 = vld [vmem:[%s3065_s25 + $0x18] sm:$0xff]  ;;  %v415_v45 = vld [vmem:[%s3065_s25 + $0x10] sm:$0xff] }
  0x3e   :  { %2031 = vmatprep.subr.mxu0 %v169_v23  ;;  %v73_v41 = vld [vmem:[%s3064_s22 + $0x20] sm:$0xff]  ;;  %2123 = vmatprep.subr.mxu1 %v416_v44  ;;  %v414_v46 = vld [vmem:[%s3065_s25 + $0x8] sm:$0xff] }
  0x3f   :  { %2032 = vmatpush3.msra.mxu0 %v153_v24  ;;  %2124 = vmatpush3.msra.mxu1 %v416_v44  ;;  %v413_v47 = vld [vmem:[%s3065_s25] sm:$0xff]  ;;  %v410_v10 = vld [vmem:[%s3067_s24 + $0x8] sm:$0xff] }
  0x40   :  { %2033 = vmatprep.subr.mxu0 %v168_v25  ;;  %2125 = vmatprep.subr.mxu1 %v415_v45  ;;  %v1893_v54 = vld [vmem:[%s3066_s5] ss:$0 sm:$0xff]  ;;  %v1911_v19 = vld [vmem:[%s3037_s6 + $0x2] ss:$0 sm:$0xff] }
  0x41   :  { %2034 = vmatpush3.msra.mxu0 %v152_v26  ;;  %2126 = vmatpush3.msra.mxu1 %v415_v45  ;;  %v409_v3 = vld [vmem:[%s3067_s24] sm:$0xff] }
  0x42   :  { %2035 = vmatprep.subr.mxu0 %v167_v27  ;;  %2127 = vmatprep.subr.mxu1 %v414_v46  ;;  %v1894_v13 = vld [vmem:[%s3068_s3] ss:$0 sm:$0xff]  ;;  %v1902_v26 = vld [vmem:[%s3037_s6 + $0x1] ss:$0 sm:$0xff] }
  0x43   :  { %2036 = vmatpush3.msra.mxu0 %v151_v28  ;;  %2128 = vmatpush3.msra.mxu1 %v414_v46  ;;  %v1897_v18 = vld [vmem:[%s3037_s6] ss:$0 sm:$0xff] }
  0x44   :  { %2037 = vmatprep.subr.mxu0 %v166_v29  ;;  %2129 = vmatprep.subr.mxu1 %v413_v47  ;;  %v2845_v29 = vld [vmem:[%s3038_s7 + $0x8] sm:$0xff] }
  0x45   :  { %2038 = vmatpush3.msra.mxu0 %v150_v30  ;;  %2130 = vmatpush3.msra.mxu1 %v413_v47 }
  0x46   :  { %2039 = vmatprep.subr.mxu0 %v165_v31 }
  0x47   :  { %2040 = vmatpush3.msra.mxu0 %v149_v32  ;;  %v2850_v32 = vld [vmem:[%s3038_s7] sm:$0xff]  ;;  %s2317_s7 = smov 64  }
  0x48   :  { %2041 = vmatprep.subr.mxu0 %v164_v33 }
  0x49   :  { %2042 = vmatpush3.msra.mxu0 %v148_v34 }
  0x4a   :  { %2043 = vmatprep.subr.mxu0 %v163_v35 }
  0x4b   :  { %2044 = vmatpush3.msra.mxu0 %v147_v36 }
  0x4c   :  { %2045 = vmatprep.subr.mxu0 %v162_v37 }
  0x4d   :  { %2046 = vmatpush3.msra.mxu0 %v146_v38 }
  0x4e   :  { %2047 = vmatprep.subr.mxu0 %v161_v39 }
  0x4f   :  { %2048 = vmatpush3.msra.mxu0 %v145_v40 }
  0x50   :  { %399 = vmatmul.mubr.f32.vlgmr.msra.gmra.mxu0 %v73_v41 }
  0x51   :  { %403 = vmatprep.mubr.f32.mxu0 %v80_v42 }
  0x54   :  { %404 = vmatmul.mubr.f32.gmra.mxu0 %v79_v43 }
  0xee   :  { %v1973_v48 = vpop.f32.mrf.mxu0 }
  0xf0   :  { %v1974_v49 = vpop.f32.mrf.mxu0 }
  0xf1   :  { %v2011_v50 = vpop.f32.mrf.mxu1  ;;  %v1975_v53 = vadd.f32 %v1974_v49, %v1973_v48 }
  0xf3   :  { %v2012_v52 = vpop.f32.mrf.mxu1  ;;  %v251_v57 = vadd.f32 %v1975_v53, %v1893_v54 }
  0xf4   :  { %v1976_v51 = vpop.f32.mrf.mxu0  ;;  %v2013_v58 = vadd.f32 %v2012_v52, %v2011_v50 }
  0xf6   :  { %v1977_v55 = vpop.f32.mrf.mxu0  ;;  %v2014_v56 = vpop.f32.mrf.mxu1  ;;  %v326_v63 = vadd.f32 %v2013_v58, %v251_v57 }
  0xf7   :  { %v1978_v59 = vadd.f32 %v1977_v55, %v1976_v51 }
  0xf8   :  { %v2015_v60 = vpop.f32.mrf.mxu1 }
  0xf9   :  { %v256_v0 = vadd.f32 %v1978_v59, %v1893_v54  ;;  %v2016_v1 = vadd.f32 %v2015_v60, %v2014_v56 }
  0xfb   :  { %v331_v7 = vadd.f32 %v2016_v1, %v256_v0 }
 0x110   :  { %v2049_v61 = vpop.f32.mrf.mxu0 }
 0x112   :  { %v2050_v62 = vpop.f32.mrf.mxu0 }
 0x113   :  { %v2051_v2 = vadd.f32 %v2050_v62, %v2049_v61 }
 0x114   :  { %v2052_v4 = vpop.f32.mrf.mxu0 }
 0x115   :  { %v401_v5 = vadd.f32 %v2051_v2, %v326_v63 }
 0x116   :  { %v2053_v6 = vpop.f32.mrf.mxu0 }
 0x117   :  { %v2773_v8 = vadd.f32 %v409_v3, %v401_v5  ;;  %v2054_v9 = vadd.f32 %v2053_v6, %v2052_v4 }
 0x119   :  { %v406_v11 = vadd.f32 %v2054_v9, %v331_v7  ;;  %2131 = vmatprep.mubr.msk.f32.mxu1 %vm424_vm0, %v2773_v8 }
 0x11b   :  { %v2780_v12 = vadd.f32 %v410_v10, %v406_v11 }
 0x11d   :  { %2132 = vmatmul.mubr.msk.f32.vlgmr.msra.gmra.mxu1 %vm424_vm0, %v2780_v12 }
 0x1dd   :  { %v2133_v14 = vpop.f32.mrf.mxu1 }
 0x1de   :  { %v2787_v15 = vadd.f32 %v2133_v14, %v1894_v13 }
 0x1df   :  { %v497_v16 = vpop.f32.mrf.mxu1 }
 0x1e0   :  { %v2789_v17 = vadd.f32 %v1894_v13, %v497_v16  ;;  %519 = vrot.lane.b32.xlu0 %v2787_v15, %s2316_s28  ;;  %v935_v24 = vmul.f32 %v1911_v19, %v2787_v15  ;;  %v514_v25 = vmul.f32 %v1897_v18, %v2787_v15  ;;  %v641_v28 = vmul.f32 %v1902_v26, %v2787_v15 }
 0x1e2   :  { %v513_v20 = vmul.f32 %v1897_v18, %v2789_v17  ;;  %v934_v21 = vmul.f32 %v1911_v19, %v2789_v17  ;;  %v640_v27 = vmul.f32 %v1902_v26, %v2789_v17 }
 0x1e4   :  { %517 = vrot.lane.b32.xlu0 %v2789_v17, %s2316_s28  ;;  %2138 = vmatprep.mubr.msk.f32.mxu1 %vm424_vm0, %v513_v20 }
 0x1e5   :  { %2166 = vmatprep.mubr.msk.f32.mxu0 %vm424_vm0, %v934_v21 }
 0x252   :  { %v2803_v22 = vpop.permute.xlu0 %519 }
 0x253   :  { %2134 = vmatprep.subr.msk.mxu1 %vm424_vm0, %v2803_v22  ;;  %2162 = vmatprep.subr.msk.mxu0 %vm424_vm0, %v2803_v22 }
 0x254   :  { %2135 = vmatpush3.xpose.msk.msra.mxu1 %vm424_vm0, %v2803_v22  ;;  %2163 = vmatpush3.xpose.msk.msra.mxu0 %vm424_vm0, %v2803_v22 }
 0x256   :  { %v2813_v23 = vpop.permute.xlu0 %517 }
 0x257   :  { %2136 = vmatprep.subr.msk.mxu1 %vm424_vm0, %v2813_v23  ;;  %2164 = vmatprep.subr.msk.mxu0 %vm424_vm0, %v2813_v23 }
 0x258   :  { %2137 = vmatpush3.xpose.msk.msra.mxu1 %vm424_vm0, %v2813_v23  ;;  %2165 = vmatpush3.xpose.msk.msra.mxu0 %vm424_vm0, %v2813_v23 }
 0x259   :  { %2141 = vmatprep.subr.msk.mxu1 %vm424_vm0, %v2803_v22 }
 0x25b   :  { %2139 = vmatmul.mubr.msk.f32.vlgmr.msra.gmra.mxu1 %vm424_vm0, %v514_v25  ;;  %2167 = vmatmul.mubr.msk.f32.vlgmr.msra.gmra.mxu0 %vm424_vm0, %v935_v24 }
 0x25c   :  { %2142 = vmatpush3.xpose.msk.msra.mxu1 %vm424_vm0, %v2803_v22  ;;  %2145 = vmatprep.mubr.msk.f32.mxu1 %vm424_vm0, %v640_v27 }
 0x25d   :  { %2143 = vmatprep.subr.msk.mxu1 %vm424_vm0, %v2813_v23 }
 0x260   :  { %2144 = vmatpush3.xpose.msk.msra.mxu1 %vm424_vm0, %v2813_v23 }
 0x263   :  { %2146 = vmatmul.mubr.msk.f32.vlgmr.msra.gmra.mxu1 %vm424_vm0, %v641_v28 }
 0x31b   :  { %v2140_v30 = vpop.f32.mrf.mxu1  ;;  %v2168_v31 = vpop.f32.mrf.mxu0 }
 0x31c   :  { %v603_v33 = vadd.f32 %v2140_v30, %v2845_v29  ;;  %v1014_v46 = vadd.f32 %v2168_v31, %v2845_v29 }
 0x31d   :  { %v597_v34 = vpop.f32.mrf.mxu1  ;;  %v1008_v35 = vpop.f32.mrf.mxu0 }
 0x31e   :  { %v598_v36 = vadd.f32 %v597_v34, %v2850_v32  ;;  %v1009_v37 = vadd.f32 %v1008_v35, %v2850_v32  ;;  %v610_v38 = vsel %vm606_vm1, %v603_v33, -inf  ;;  %v1020_v48 = vsel %vm606_vm1, %v1014_v46, -inf }
 0x31f   :  { %611 = vmax.xlane.f32.xlu1 %v610_v38 }
 0x320   :  { %v607_v39 = vsel %vm606_vm1, %v598_v36, -inf  ;;  %v1017_v40 = vsel %vm606_vm1, %v1009_v37, -inf }
 0x321   :  { %608 = vmax.xlane.f32.xlu0 %v607_v39 }
 0x323   :  { %1018 = vmax.xlane.f32.xlu1 %v1017_v40  ;;  %v2147_v41 = vpop.f32.mrf.mxu1 }
 0x324   :  { %v720_v42 = vadd.f32 %v2147_v41, %v2845_v29 }
 0x325   :  { %v714_v43 = vpop.f32.mrf.mxu1 }
 0x326   :  { %v715_v44 = vadd.f32 %v714_v43, %v2850_v32  ;;  %v726_v45 = vsel %vm606_vm1, %v720_v42, -inf }
 0x327   :  { %727 = vmax.xlane.f32.xlu1 %v726_v45 }
 0x328   :  { %v723_v47 = vsel %vm606_vm1, %v715_v44, -inf }
 0x32b   :  { %724 = vmax.xlane.f32.xlu1 %v723_v47 }
 0x32f   :  { %1021 = vmax.xlane.f32.xlu1 %v1020_v48 }
 0x337   :  { %1040 = vrot.lane.b32.xlu0 %v1911_v19, %s2317_s7 }
 0x340   :  { %746 = vrot.lane.b32.xlu1 %v1902_v26, %s2317_s7 }
 0x344   :  { %630 = vrot.lane.b32.xlu1 %v1897_v18, %s2317_s7 }
 0x3a8   :  { %v612_v49 = vpop.xlane.xlu1 %611 }
 0x3a9   :  { %v614_v61 = vsub.f32 %v603_v33, %v612_v49 }
 0x3aa   :  { %v609_v0 = vpop.xlane.xlu0 %608 }
 0x3ab   :  { %v617_v62 = vmul.f32 1.442695, %v614_v61  ;;  %v613_v1 = vsub.f32 %v598_v36, %v609_v0 }
 0x3ac   :  { %v1019_v50 = vpop.xlane.xlu1 %1018 }
 0x3ad   :  { %v615_v4 = vmul.f32 1.442695, %v613_v1  ;;  %v1023_v5 = vsub.f32 %v1009_v37, %v1019_v50 }
 0x3ae   :  { %v1041_v26 = vpop.permute.xlu0 %1040 }
 0x3af   :  { %v1025_v7 = vmul.f32 1.442695, %v1023_v5  ;;  %v1043_v27 = vmul.f32 %v1041_v26, %v2789_v17  ;;  %v1044_v30 = vmul.f32 %v1041_v26, %v2787_v15 }
 0x3b0   :  { %v728_v51 = vpop.xlane.xlu1 %727 }
 0x3b1   :  { %v730_v59 = vsub.f32 %v720_v42, %v728_v51 }
 0x3b3   :  { %v733_v60 = vmul.f32 1.442695, %v730_v59 }
 0x3b4   :  { %v725_v52 = vpop.xlane.xlu1 %724 }
 0x3b5   :  { %2254 = vpow2.f32 %v733_v60  ;;  %v729_v9 = vsub.f32 %v715_v44, %v725_v52 }
 0x3b6   :  { %2256 = vpow2.f32 %v617_v62 }
 0x3b7   :  { %v731_v10 = vmul.f32 1.442695, %v729_v9 }
 0x3b8   :  { %v1022_v53 = vpop.xlane.xlu1 %1021 }
 0x3b9   :  { %v1024_v63 = vsub.f32 %v1014_v46, %v1022_v53 }
 0x3bb   :  { %v1027_v2 = vmul.f32 1.442695, %v1024_v63 }
 0x3bc   :  { %v747_v54 = vpop.permute.xlu1 %746 }
 0x3bd   :  { %v749_v55 = vmul.f32 %v747_v54, %v2789_v17  ;;  %v750_v56 = vmul.f32 %v747_v54, %v2787_v15  ;;  %2258 = vpow2.f32 %v1027_v2 }
 0x3be   :  { %2260 = vpow2.f32 %v615_v4 }
 0x3bf   :  { %753 = vrot.lane.b32.xlu1 %v749_v55, %s2317_s7  ;;  %755 = vrot.lane.b32.xlu0 %v750_v56, %s2317_s7  ;;  %2262 = vpow2.f32 %v1025_v7  ;;  %v1918_v56 = vld [vmem:[%s3037_s6 + $0x3] ss:$0 sm:$0xff] }
 0x3c0   :  { %v631_v57 = vpop.permute.xlu1 %630  ;;  %2264 = vpow2.f32 %v731_v10 }
 0x3c1   :  { %v634_v58 = vmul.f32 %v631_v57, %v2787_v15  ;;  %v633_v21 = vmul.f32 %v631_v57, %v2789_v17  ;;  %v1141_v57 = vmul.f32 %v1918_v56, %v2789_v17 }
 0x3c2   :  { %v2255_v3 = vpop.eup %2254 }
 0x3c3   :  { %844 = vrot.lane.b32.xlu1 %v634_v58, %s2317_s7  ;;  %v738_v6 = vsel %vm606_vm1, %v2255_v3, 0.0  ;;  %v2257_v11 = vpop.eup %2256  ;;  %v1142_v58 = vmul.f32 %v1918_v56, %v2787_v15 }
 0x3c4   :  { %v622_v13 = vsel %vm606_vm1, %v2257_v11, 0.0 }
 0x3ca   :  { %v2875_v14 = vpop.eup %2258 }
 0x3cb   :  { %v1032_v16 = vsel %vm606_vm1, %v2875_v14, 0.0  ;;  %v2261_v18 = vpop.eup %2260 }
 0x3cc   :  { %v619_v19 = vsel %vm606_vm1, %v2261_v18, 0.0  ;;  %v2263_v20 = vpop.eup %2262 }
 0x3cd   :  { %v1029_v24 = vsel %vm606_vm1, %v2263_v20, 0.0  ;;  %v2265_v25 = vpop.eup %2264 }
 0x3ce   :  { %v735_v28 = vsel %vm606_vm1, %v2265_v25, 0.0 }
 0x3de   :  { %739 = vadd.xlane.f32.xlu0 %v738_v6 }
 0x3e7   :  { %623 = vadd.xlane.f32.xlu1 %v622_v13 }
 0x3eb   :  { %1033 = vadd.xlane.f32.xlu1 %v1032_v16 }
 0x3ef   :  { %620 = vadd.xlane.f32.xlu1 %v619_v19 }
 0x3f3   :  { %1030 = vadd.xlane.f32.xlu1 %v1029_v24 }
 0x3f4   :  { %842 = vrot.lane.b32.xlu0 %v633_v21, %s2317_s7 }
 0x3f7   :  { %736 = vadd.xlane.f32.xlu1 %v735_v28 }
 0x3f8   :  { %1047 = vrot.lane.b32.xlu0 %v1043_v27, %s2317_s7 }
 0x408   :  { %1049 = vrot.lane.b32.xlu1 %v1044_v30, %s2317_s7  ;;  %v1346_v30 = vld [vmem:[%s3039_s8 + $0x18] sm:$0xff] }
 0x431   :  { %v754_v31 = vpop.permute.xlu1 %753  ;;  %v756_v33 = vpop.permute.xlu0 %755 }
 0x432   :  { %2148 = vmatprep.subr.mxu1 %v756_v33 }
 0x433   :  { %2149 = vmatpush3.msra.mxu1 %v756_v33 }
 0x434   :  { %2150 = vmatprep.subr.mxu1 %v754_v31 }
 0x435   :  { %v845_v34 = vpop.permute.xlu1 %844  ;;  %2151 = vmatpush3.msra.mxu1 %v754_v31 }
 0x436   :  { %2155 = vmatprep.subr.mxu1 %v845_v34 }
 0x467   :  { %v740_v38 = vpop.xlane.xlu0 %739 }
 0x468   :  { %2266 = vrcp.f32 %v740_v38 }
 0x46b   :  { %v843_v47 = vpop.permute.xlu0 %842 }
 0x46f   :  { %v1048_v54 = vpop.permute.xlu0 %1047 }
 0x470   :  { %v624_v35 = vpop.xlane.xlu1 %623 }
 0x474   :  { %v1034_v36 = vpop.xlane.xlu1 %1033 }
 0x475   :  { %v2267_v41 = vpop.eup %2266 }
 0x476   :  { %v744_v45 = vmul.f32 %v2267_v41, %v2255_v3 }
 0x478   :  { %v621_v37 = vpop.xlane.xlu1 %620 }
 0x479   :  { %2268 = vrcp.f32 %v621_v37  ;;  %v1343_v37 = vld [vmem:[%s3039_s8] sm:$0xff] }
 0x47c   :  { %v1031_v39 = vpop.xlane.xlu1 %1030 }
 0x480   :  { %v737_v40 = vpop.xlane.xlu1 %736 }
 0x481   :  { %2270 = vrcp.f32 %v737_v40 }
 0x482   :  { %2272 = vrcp.f32 %v624_v35  ;;  %v1345_v35 = vld [vmem:[%s3039_s8 + $0x10] sm:$0xff] }
 0x483   :  { %2274 = vrcp.f32 %v1031_v39 }
 0x484   :  { %2276 = vrcp.f32 %v1034_v36  ;;  %v1050_v52 = vpop.permute.xlu1 %1049  ;;  %v1344_v36 = vld [vmem:[%s3039_s8 + $0x8] sm:$0xff]  ;;  %s2320_s8 = smov [#allocation2]  }
 0x486   :  { %v2269_v42 = vpop.eup %2268 }
 0x487   :  { %v627_v48 = vmul.f32 %v2269_v42, %v2261_v18  ;;  %v1925_v42 = vld [vmem:[%s3040_s9] ss:$0 sm:$0xff]  ;;  %s1885_s9 = sshll.u32 %s2320_s8, 4  ;;  %s1886_s9 = int_to_ptr.vmem [resolvable:$true] %s1885_s9 }
 0x488   :  { %p2299_p1 = scmp.lt.s32.totalorder %s1886_s9, %s1886_s9 }
 0x48e   :  { %v2271_v43 = vpop.eup %2270 }
 0x48f   :  { %v743_v44 = vmul.f32 %v2271_v43, %v2265_v25  ;;  %v2273_v46 = vpop.eup %2272 }
 0x490   :  { %v2275_v49 = vpop.eup %2274  ;;  %v628_v50 = vmul.f32 %v2273_v46, %v2257_v11 }
 0x491   :  { %2152 = vmatprep.mubr.msk.f32.mxu1 %vm606_vm1, %v743_v44  ;;  %v2277_v51 = vpop.eup %2276  ;;  %v1037_v53 = vmul.f32 %v2275_v49, %v2263_v20 }
 0x492   :  { %2153 = vmatmul.mubr.msk.f32.vlgmr.msra.gmra.mxu1 %vm606_vm1, %v744_v45  ;;  %v1038_v55 = vmul.f32 %v2277_v51, %v2875_v14 }
 0x493   :  { %2156 = vmatpush3.msra.mxu1 %v845_v34  ;;  %2159 = vmatprep.mubr.msk.f32.mxu1 %vm606_vm1, %v627_v48 }
 0x494   :  { %2157 = vmatprep.subr.mxu1 %v843_v47 }
 0x495   :  { %2158 = vmatpush3.msra.mxu1 %v843_v47 }
 0x496   :  { %2169 = vmatprep.subr.mxu1 %v1050_v52  ;;  %2160 = vmatmul.mubr.msk.f32.vlgmr.msra.gmra.mxu1 %vm606_vm1, %v628_v50 }
 0x497   :  { %2170 = vmatpush3.msra.mxu1 %v1050_v52  ;;  %2173 = vmatprep.mubr.msk.f32.mxu1 %vm606_vm1, %v1037_v53 }
 0x498   :  { %2171 = vmatprep.subr.mxu1 %v1048_v54 }
 0x499   :  { %2172 = vmatpush3.msra.mxu1 %v1048_v54 }
 0x49a   :  { %2176 = vmatprep.subr.msk.mxu1 %vm424_vm0, %v2803_v22  ;;  %2174 = vmatmul.mubr.msk.f32.vlgmr.msra.gmra.mxu1 %vm606_vm1, %v1038_v55 }
 0x49b   :  { %2177 = vmatpush3.xpose.msk.msra.mxu1 %vm424_vm0, %v2803_v22  ;;  %2180 = vmatprep.mubr.msk.f32.mxu1 %vm424_vm0, %v1141_v57 }
 0x49c   :  { %2178 = vmatprep.subr.msk.mxu1 %vm424_vm0, %v2813_v23 }
 0x49f   :  { %2179 = vmatpush3.xpose.msk.msra.mxu1 %vm424_vm0, %v2813_v23 }
 0x4a2   :  { %2181 = vmatmul.mubr.msk.f32.vlgmr.msra.gmra.mxu1 %vm424_vm0, %v1142_v58 }
 0x552   :  { %v2154_v59 = vpop.f32.mrf.mxu1 }
 0x554   :  { %v831_v60 = vpop.f32.mrf.mxu1 }
 0x556   :  { %v2161_v61 = vpop.f32.mrf.mxu1 }
 0x557   :  { %v926_v62 = vadd.f32 %v2161_v61, %v2154_v59  ;;  %v1483_v61 = vld [vmem:[%s3043_s12 + $0x8] sm:$0xff] }
 0x558   :  { %v920_v63 = vpop.f32.mrf.mxu1 }
 0x559   :  { %v921_v0 = vadd.f32 %v920_v63, %v831_v60  ;;  %v1484_v60 = vld [vmem:[%s3043_s12 + $0x10] sm:$0xff]  ;;  %v1583_v63 = vld [vmem:[%s3045_s14 + $0x38] sm:$0xff] }
 0x55a   :  { %v2175_v1 = vpop.f32.mrf.mxu1 }
 0x55b   :  { %v1135_v22 = vadd.f32 %v2175_v1, %v926_v62  ;;  %v1482_v62 = vld [vmem:[%s3043_s12] sm:$0xff]  ;;  %v1581_v1 = vld [vmem:[%s3045_s14 + $0x28] sm:$0xff] }
 0x55c   :  { %v1125_v2 = vpop.f32.mrf.mxu1 }
 0x55d   :  { %v1134_v3 = vadd.f32 %v1125_v2, %v921_v0  ;;  %v1582_v0 = vld [vmem:[%s3045_s14 + $0x30] sm:$0xff] }
 0x562   :  { %v2182_v4 = vpop.f32.mrf.mxu1 }
 0x563   :  { %v1221_v5 = vadd.f32 %v2182_v4, %v2845_v29 }
 0x564   :  { %v1215_v6 = vpop.f32.mrf.mxu1 }
 0x565   :  { %v1216_v23 = vadd.f32 %v1215_v6, %v2850_v32  ;;  %v1227_v7 = vsel %vm606_vm1, %v1221_v5, -inf }
 0x566   :  { %1228 = vmax.xlane.f32.xlu0 %v1227_v7 }
 0x567   :  { %v1224_v9 = vsel %vm606_vm1, %v1216_v23, -inf }
 0x568   :  { %1225 = vmax.xlane.f32.xlu1 %v1224_v9  ;;  %v1928_v9 = vld [vmem:[%s3041_s10] ss:$0 sm:$0xff]  ;;  %s2294_s10 = scalar_lea.vmem %s1886_s9, 32 }
 0x569   :  { %p2295_p0 = scmp.ne.s32.totalorder %s1886_s9, %s2294_s10  ;;  %p2300_p2 = scmp.lt.s32.totalorder %s2294_s10, %s2294_s10 }
 0x56b   :  { %p2301_p3 = por %p2300_p2, %p2299_p1 }
 0x56d   :  { %p2302_p4 = pnand %p2301_p3, %p2295_p0 }
 0x57c   :  { %1247 = vrot.lane.b32.xlu0 %v1918_v56, %s2317_s7 }
 0x5ef   :  { %v1229_v10 = vpop.xlane.xlu0 %1228 }
 0x5f0   :  { %v1231_v11 = vsub.f32 %v1221_v5, %v1229_v10 }
 0x5f1   :  { %v1226_v13 = vpop.xlane.xlu1 %1225 }
 0x5f2   :  { %v1234_v14 = vmul.f32 1.442695, %v1231_v11  ;;  %v1230_v16 = vsub.f32 %v1216_v23, %v1226_v13  ;;  %v1929_v11 = vld [vmem:[%s3042_s11] ss:$0 sm:$0xff] }
 0x5f3   :  { %v1248_v18 = vpop.permute.xlu0 %1247 }
 0x5f4   :  { %2278 = vpow2.f32 %v1234_v14  ;;  %v1232_v19 = vmul.f32 1.442695, %v1230_v16  ;;  %v1250_v29 = vmul.f32 %v1248_v18, %v2789_v17  ;;  %v1251_v25 = vmul.f32 %v1248_v18, %v2787_v15 }
 0x5f6   :  { %2280 = vpow2.f32 %v1232_v19  ;;  %1254 = vrot.lane.b32.xlu0 %v1250_v29, %s2317_s7 }
 0x601   :  { %v2279_v32 = vpop.eup %2278 }
 0x602   :  { %v1239_v20 = vsel %vm606_vm1, %v2279_v32, 0.0 }
 0x603   :  { %v2281_v21 = vpop.eup %2280  ;;  %1240 = vadd.xlane.f32.xlu1 %v1239_v20  ;;  %v1578_v20 = vld [vmem:[%s3045_s14 + $0x10] sm:$0xff] }
 0x604   :  { %v1236_v24 = vsel %vm606_vm1, %v2281_v21, 0.0 }
 0x607   :  { %1237 = vadd.xlane.f32.xlu1 %v1236_v24  ;;  %v1576_v24 = vld [vmem:[%s3045_s14] sm:$0xff] }
 0x618   :  { %1256 = vrot.lane.b32.xlu1 %v1251_v25, %s2317_s7  ;;  %v1930_v25 = vld [vmem:[%s3044_s13] ss:$0 sm:$0xff] }
 0x668   :  { %v1255_v28 = vpop.permute.xlu0 %1254 }
 0x68c   :  { %v1241_v26 = vpop.xlane.xlu1 %1240 }
 0x68d   :  { %2282 = vrcp.f32 %v1241_v26 }
 0x690   :  { %v1238_v27 = vpop.xlane.xlu1 %1237 }
 0x691   :  { %2284 = vrcp.f32 %v1238_v27 }
 0x694   :  { %v1257_v17 = vpop.permute.xlu1 %1256 }
 0x695   :  { %2183 = vmatprep.subr.mxu0 %v1257_v17 }
 0x696   :  { %2184 = vmatpush3.msra.mxu0 %v1257_v17 }
 0x697   :  { %2185 = vmatprep.subr.mxu0 %v1255_v28 }
 0x698   :  { %2186 = vmatpush3.msra.mxu0 %v1255_v28 }
 0x699   :  { %2190 = vmatprep.subr.mxu0 %v1346_v30 }
 0x69a   :  { %v2283_v31 = vpop.eup %2282 }
 0x69b   :  { %v1245_v34 = vmul.f32 %v2283_v31, %v2279_v32  ;;  %v1579_v32 = vld [vmem:[%s3045_s14 + $0x18] sm:$0xff] }
 0x69e   :  { %v2285_v33 = vpop.eup %2284 }
 0x69f   :  { %v1244_v15 = vmul.f32 %v2285_v33, %v2281_v21  ;;  %v1577_v21 = vld [vmem:[%s3045_s14 + $0x8] sm:$0xff]  ;;  %v1933_v33 = vld [vmem:[%s3046_s15] ss:$0 sm:$0xff] }
 0x6a1   :  { %2187 = vmatprep.mubr.msk.f32.mxu0 %vm606_vm1, %v1244_v15 }
 0x6a2   :  { %2188 = vmatmul.mubr.msk.f32.vlgmr.msra.gmra.mxu0 %vm606_vm1, %v1245_v34 }
 0x6a3   :  { %2191 = vmatpush3.msra.mxu0 %v1346_v30 }
 0x6a4   :  { %2192 = vmatprep.subr.mxu0 %v1345_v35 }
 0x6a5   :  { %2193 = vmatpush3.msra.mxu0 %v1345_v35 }
 0x6a6   :  { %2194 = vmatprep.subr.mxu0 %v1344_v36 }
 0x6a7   :  { %2195 = vmatpush3.msra.mxu0 %v1344_v36 }
 0x6a8   :  { %2196 = vmatprep.subr.mxu0 %v1343_v37 }
 0x6a9   :  { %2197 = vmatpush3.msra.mxu0 %v1343_v37 }
 0x6aa   :  { %2212 = vmatprep.subr.mxu0 %v1583_v63 }
 0x762   :  { %v2189_v38 = vpop.f32.mrf.mxu0 }
 0x763   :  { %v1342_v41 = vadd.f32 %v2189_v38, %v1135_v22  ;;  %v1580_v22 = vld [vmem:[%s3045_s14 + $0x20] sm:$0xff] }
 0x764   :  { %v1332_v39 = vpop.f32.mrf.mxu0 }
 0x765   :  { %v1341_v40 = vadd.f32 %v1332_v39, %v1134_v3 }
 0x767   :  { %2198 = vmatprep.mubr.msk.f32.mxu0 %vm424_vm0, %v1341_v40 }
 0x768   :  { %2199 = vmatmul.mubr.msk.f32.vlgmr.msra.gmra.mxu0 %vm424_vm0, %v1342_v41 }
 0x769   :  { %2213 = vmatpush3.msra.mxu0 %v1583_v63 }
 0x76a   :  { %2214 = vmatprep.subr.mxu0 %v1582_v0 }
 0x76b   :  { %2215 = vmatpush3.msra.mxu0 %v1582_v0 }
 0x76c   :  { %2216 = vmatprep.subr.mxu0 %v1581_v1 }
 0x76d   :  { %2217 = vmatpush3.msra.mxu0 %v1581_v1 }
 0x76e   :  { %2218 = vmatprep.subr.mxu0 %v1580_v22 }
 0x76f   :  { %2219 = vmatpush3.msra.mxu0 %v1580_v22  ;;  %v1719_v22 = vld [vmem:[%s3049_s18] sm:$0x3] }
 0x770   :  { %2220 = vmatprep.subr.mxu0 %v1579_v32 }
 0x771   :  { %2221 = vmatpush3.msra.mxu0 %v1579_v32 }
 0x772   :  { %2222 = vmatprep.subr.mxu0 %v1578_v20 }
 0x773   :  { %2223 = vmatpush3.msra.mxu0 %v1578_v20 }
 0x774   :  { %2224 = vmatprep.subr.mxu0 %v1577_v21 }
 0x775   :  { %2225 = vmatpush3.msra.mxu0 %v1577_v21 }
 0x776   :  { %2226 = vmatprep.subr.mxu0 %v1576_v24 }
 0x777   :  { %2227 = vmatpush3.msra.mxu0 %v1576_v24 }
 0x828   :  { %v2200_v43 = vpop.f32.mrf.mxu0 }
 0x829   :  { %v1432_v44 = vadd.f32 %v2200_v43, %v1925_v42 }
 0x82a   :  { %v1426_v45 = vpop.f32.mrf.mxu0 }
 0x82b   :  { %v1427_v46 = vadd.f32 %v1925_v42, %v1426_v45  ;;  %v1436_v47 = vadd.f32 %v1432_v44, %v2780_v12 }
 0x82d   :  { %v1442_v48 = vsel %vm424_vm0, %v1436_v47, 0.0  ;;  %v1435_v49 = vadd.f32 %v1427_v46, %v2773_v8  ;;  %v1485_v8 = vld [vmem:[%s3043_s12 + $0x18] sm:$0xff] }
 0x82e   :  { %1443 = vadd.xlane.f32.xlu1 %v1442_v48  ;;  %2201 = vmatprep.subr.mxu1 %v1485_v8 }
 0x82f   :  { %v1439_v50 = vsel %vm424_vm0, %v1435_v49, 0.0  ;;  %2202 = vmatpush3.msra.mxu1 %v1485_v8 }
 0x830   :  { %1440 = vadd.xlane.f32.xlu0 %v1439_v50  ;;  %2203 = vmatprep.subr.mxu1 %v1484_v60 }
 0x831   :  { %2204 = vmatpush3.msra.mxu1 %v1484_v60  ;;  %v1937_v60 = vld [vmem:[%s3048_s17] ss:$0 sm:$0xff] }
 0x832   :  { %2205 = vmatprep.subr.mxu1 %v1483_v61 }
 0x833   :  { %2206 = vmatpush3.msra.mxu1 %v1483_v61 }
 0x834   :  { %2207 = vmatprep.subr.mxu1 %v1482_v62 }
 0x835   :  { %2208 = vmatpush3.msra.mxu1 %v1482_v62 }
 0x8b7   :  { %v1444_v51 = vpop.xlane.xlu1 %1443 }
 0x8b8   :  { %v1447_v52 = vmul.f32 0.03125, %v1444_v51  ;;  %v2318_v51 = vmov 0.0  }
 0x8b9   :  { %v1441_v53 = vpop.xlane.xlu0 %1440  ;;  %2231 = vmatprep.subr.mxu1 %v2318_v51 }
 0x8ba   :  { %v1446_v54 = vmul.f32 0.03125, %v1441_v53  ;;  %v1449_v55 = vsub.f32 %v1436_v47, %v1447_v52 }
 0x8bc   :  { %v1448_v56 = vsub.f32 %v1435_v49, %v1446_v54  ;;  %v1451_v59 = vmul.f32 %v1449_v55, %v1449_v55 }
 0x8be   :  { %v1450_v57 = vmul.f32 %v1448_v56, %v1448_v56  ;;  %v1455_v12 = vsel %vm424_vm0, %v1451_v59, 0.0  ;;  %v1936_v59 = vld [vmem:[%s3047_s16] ss:$0 sm:$0xff] }
 0x8c0   :  { %v1452_v58 = vsel %vm424_vm0, %v1450_v57, 0.0 }
 0x8c1   :  { %1453 = vadd.xlane.f32.xlu0 %v1452_v58 }
 0x8c5   :  { %1456 = vadd.xlane.f32.xlu0 %v1455_v12 }
 0x94a   :  { %v1454_v2 = vpop.xlane.xlu0 %1453 }
 0x94b   :  { %v1458_v3 = vmul.f32 0.03125, %v1454_v2  ;;  %v1796_v2 = vld [vmem:[%s3050_s19 + $0x18] sm:$0xff] }
 0x94d   :  { %v1460_v4 = vadd.f32 1e-05, %v1458_v3  ;;  %v1795_v3 = vld [vmem:[%s3050_s19 + $0x10] sm:$0xff] }
 0x94e   :  { %v1457_v5 = vpop.xlane.xlu0 %1456 }
 0x94f   :  { %2286 = vrsqrt.f32 %v1460_v4  ;;  %v1459_v6 = vmul.f32 0.03125, %v1457_v5  ;;  %v1794_v4 = vld [vmem:[%s3050_s19 + $0x8] sm:$0xff]  ;;  %v1793_v5 = vld [vmem:[%s3050_s19] sm:$0xff] }
 0x951   :  { %v1461_v23 = vadd.f32 1e-05, %v1459_v6 }
 0x953   :  { %2288 = vrsqrt.f32 %v1461_v23 }
 0x95c   :  { %v2287_v7 = vpop.eup %2286 }
 0x95d   :  { %v1464_v10 = vmul.f32 %v2287_v7, %v1448_v56  ;;  %v1939_v7 = vld [vmem:[%s3051_s20] ss:$0 sm:$0xff] }
 0x95f   :  { %v1472_v13 = vmul.f32 %v1928_v9, %v1464_v10 }
 0x960   :  { %v2289_v14 = vpop.eup %2288 }
 0x961   :  { %v1465_v16 = vmul.f32 %v2289_v14, %v1449_v55  ;;  %v1480_v18 = vadd.f32 %v1929_v11, %v1472_v13 }
 0x963   :  { %v1473_v19 = vmul.f32 %v1928_v9, %v1465_v16  ;;  %2209 = vmatprep.mubr.msk.f32.mxu1 %vm424_vm0, %v1480_v18 }
 0x965   :  { %v1481_v29 = vadd.f32 %v1929_v11, %v1473_v19 }
 0x967   :  { %2210 = vmatmul.mubr.msk.f32.vlgmr.msra.gmra.mxu1 %vm424_vm0, %v1481_v29 }
 0x968   :  { %2235 = vmatprep.mubr.msk.f32.mxu1 %vm2319_vm3, %v2318_v51 }
 0xa27   :  { %v2211_v26 = vpop.f32.mrf.mxu1 }
 0xa28   :  { %v1571_v27 = vadd.f32 %v2211_v26, %v1930_v25 }
 0xa29   :  { %v1565_v17 = vpop.f32.mrf.mxu1 }
 0xa2a   :  { %v1566_v28 = vadd.f32 %v1930_v25, %v1565_v17  ;;  %v1575_v31 = vmax.f32 %v1571_v27, 0.0 }
 0xa2c   :  { %v1574_v30 = vmax.f32 %v1566_v28, 0.0 }
 0xa2e   :  { %2228 = vmatprep.mubr.msk.f32.mxu0 %vm1591_vm2, %v1574_v30 }
 0xa2f   :  { %2229 = vmatmul.mubr.msk.f32.vlgmr.msra.gmra.mxu0 %vm1591_vm2, %v1575_v31 }
 0xaef   :  { %v2230_v15 = vpop.f32.mrf.mxu0 }
 0xaf0   :  { %v1670_v34 = vadd.f32 %v2230_v15, %v1933_v33 }
 0xaf1   :  { %v1664_v35 = vpop.f32.mrf.mxu0 }
 0xaf2   :  { %v1665_v36 = vadd.f32 %v1933_v33, %v1664_v35  ;;  %v1674_v37 = vadd.f32 %v1670_v34, %v1481_v29 }
 0xaf4   :  { %v1680_v38 = vsel %vm424_vm0, %v1674_v37, 0.0  ;;  %v1673_v39 = vadd.f32 %v1665_v36, %v1480_v18 }
 0xaf5   :  { %1681 = vadd.xlane.f32.xlu1 %v1680_v38 }
 0xaf6   :  { %v1677_v40 = vsel %vm424_vm0, %v1673_v39, 0.0 }
 0xaf7   :  { %1678 = vadd.xlane.f32.xlu0 %v1677_v40 }
 0xb7e   :  { %v1682_v41 = vpop.xlane.xlu1 %1681 }
 0xb7f   :  { %v1684_v42 = vmul.f32 0.03125, %v1682_v41 }
 0xb80   :  { %v1679_v43 = vpop.xlane.xlu0 %1678 }
 0xb81   :  { %v1686_v44 = vsub.f32 %v1674_v37, %v1684_v42  ;;  %v1683_v45 = vmul.f32 0.03125, %v1679_v43 }
 0xb83   :  { %v1685_v46 = vsub.f32 %v1673_v39, %v1683_v45  ;;  %v1688_v47 = vmul.f32 %v1686_v44, %v1686_v44 }
 0xb85   :  { %v1692_v48 = vsel %vm424_vm0, %v1688_v47, 0.0  ;;  %v1687_v49 = vmul.f32 %v1685_v46, %v1685_v46 }
 0xb86   :  { %1693 = vadd.xlane.f32.xlu1 %v1692_v48 }
 0xb87   :  { %v1689_v50 = vsel %vm424_vm0, %v1687_v49, 0.0 }
 0xb88   :  { %1690 = vadd.xlane.f32.xlu0 %v1689_v50 }
 0xc0f   :  { %v1694_v52 = vpop.xlane.xlu1 %1693 }
 0xc10   :  { %v1696_v53 = vmul.f32 0.03125, %v1694_v52 }
 0xc11   :  { %v1691_v54 = vpop.xlane.xlu0 %1690 }
 0xc12   :  { %v1698_v55 = vadd.f32 1e-05, %v1696_v53  ;;  %v1695_v56 = vmul.f32 0.03125, %v1691_v54 }
 0xc14   :  { %2290 = vrsqrt.f32 %v1698_v55  ;;  %v1697_v57 = vadd.f32 1e-05, %v1695_v56 }
 0xc16   :  { %2292 = vrsqrt.f32 %v1697_v57 }
 0xc21   :  { %v2291_v58 = vpop.eup %2290 }
 0xc22   :  { %v1702_v12 = vmul.f32 %v2291_v58, %v1686_v44 }
 0xc23   :  { %v2293_v8 = vpop.eup %2292 }
 0xc24   :  { %v1710_v61 = vmul.f32 %v1936_v59, %v1702_v12  ;;  %v1701_v62 = vmul.f32 %v2293_v8, %v1685_v46 }
 0xc26   :  { %v1718_v63 = vadd.f32 %v1937_v60, %v1710_v61  ;;  %v1709_v0 = vmul.f32 %v1936_v59, %v1701_v62 }
 0xc28   :  { %2232 = vmatpush3.msra.mxu1 %v1718_v63  ;;  %v1717_v1 = vadd.f32 %v1937_v60, %v1709_v0 }
 0xc29   :  { %2233 = vmatprep.subr.mxu1 %v2318_v51 }
 0xc2a   :  { %2234 = vmatpush3.msra.mxu1 %v1717_v1 }
 0xc2b   :  { %2236 = vmatmul.mubr.msk.f32.vlgmr.msra.gmra.mxu1 %vm606_vm1, %v1719_v22  ;;  %2238 = vmatprep.subr.mxu1 %v2318_v51 }
 0xc2c   :  { %2239 = vmatpush3.msra.mxu1 %v1796_v2  ;;  %2246 = vmatprep.mubr.msk.f32.mxu1 %vm2319_vm3, %v2318_v51 }
 0xc2d   :  { %2240 = vmatprep.subr.mxu1 %v2318_v51 }
 0xc2e   :  { %2241 = vmatpush3.msra.mxu1 %v1795_v3 }
 0xc2f   :  { %2242 = vmatprep.subr.mxu1 %v2318_v51 }
 0xc30   :  { %2243 = vmatpush3.msra.mxu1 %v1794_v4 }
 0xc31   :  { %2244 = vmatprep.subr.mxu1 %v2318_v51 }
 0xc32   :  { %2245 = vmatpush3.msra.mxu1 %v1793_v5 }
 0xceb   :  { %v1789_v6 = vpop.f32.mrf.mxu1 }
 0xcec   :  { %2247 = vmatmul.mubr.msk.f32.vlgmr.msra.gmra.mxu1 %vm424_vm0, %v1789_v6 }
 0xced   :  { %v2237_v23 = vpop.f32.mrf.mxu1 }
 0xdac   :  { %v1873_v9 = vpop.f32.mrf.mxu1 }
 0xdad   :  { %v1874_v10 = vadd.f32 %v1939_v7, %v1873_v9 }
 0xdae   :  { %v2248_v11 = vpop.f32.mrf.mxu1 }
 0xdaf   :  { %1878 = vst.msk [vmem:[#allocation2] sm:$0x3] %vm1877_vm4, %v1874_v10 }
 0xdb0   :  { %2305 = shalt.err (!%p2302_p4)
}
 0xdb1   :  { %1888 = dma.vmem_to_hbm [thread:$0]  %s1886_s9, 32, %s3052_s21, [#allocation3]  }
 0xdb2   :  { %2314 = dma.done.wait [#allocation3], 32  }
 0xdb3   :  { %2315 = vsyncadd [#allocation3], 4294967264 }
 0xdb4   :  { %1892 = vsyncpa [#allocation3], 1 }

</bundles_post_ra>
